<compile_context>
chip_gen: v7x
topology: tpu7x:2x2x1
jax: 0.10.0
libtpu: 0.0.40
codegen_flags: <defaults>
</compile_context>

<pallas_src>
import functools

import numpy as np
import jax
import jax.numpy as jnp
from jax.experimental import pallas as pl
from jax.experimental.pallas import tpu as pltpu


# ----------------------------------------------------------------------------
# Packed-weight row offsets (everything 8-row sublane aligned)
# ----------------------------------------------------------------------------
def _round8(x):
    return ((x + 7) // 8) * 8


def _msg_offsets(D, ETH):
    o = {}
    o["w1s"] = 0
    o["w1r"] = _round8(D)
    o["w2"] = o["w1r"] + _round8(D)
    o["b1"] = o["w2"] + _round8(ETH)
    o["b2"] = o["b1"] + 8
    o["rows"] = o["b2"] + 8
    return o


def _out_offsets(D, H, ETH):
    o = {}
    o["wo1x"] = 0
    o["wo1a"] = _round8(D)
    o["wo2"] = o["wo1a"] + _round8(H)
    o["wo3"] = o["wo2"] + _round8(H)
    o["rsum"] = o["wo3"] + _round8(H)
    o["bo1"] = o["rsum"] + _round8(ETH)
    o["bo2"] = o["bo1"] + 8
    o["bo3"] = o["bo2"] + 8
    o["rows"] = o["bo3"] + 8
    return o


# ----------------------------------------------------------------------------
# Pallas kernel: all pred_steps of the decoder on a block of Mb timestep slabs.
# ----------------------------------------------------------------------------
def _make_decoder_kernel(Mb, N, D, H, E, ET, pred_steps):
    MbN = Mb * N
    MbE = Mb * E
    ETH = ET * H
    mo = _msg_offsets(D, ETH)
    oo = _out_offsets(D, H, ETH)

    def kernel(x_ref, gs_ref, gr_ref, aggm_ref, ew_ref, wmsg_ref, wout_ref, o_ref):
        f32 = jnp.float32
        bf16 = jnp.bfloat16

        def mm(a, b):  # bf16 x bf16 MXU matmul, f32 accumulation
            return jnp.dot(a, b, preferred_element_type=f32)

        # --- constants, loaded once and reused by both prediction steps -----
        gat_s = gs_ref[...]                        # bf16 [MbE, MbN] block-diag one-hot (send)
        gat_r = gr_ref[...]                        # bf16 [MbE, MbN] block-diag one-hot (recv)
        aggm = aggm_ref[...]                       # bf16 [MbN, MbE] block-diag rel_rec^T
        ew = ew_ref[...]                           # f32  [MbE, ET*H] edge probs * skip mask

        w1s = wmsg_ref[mo["w1s"]:mo["w1s"] + D, :]       # bf16 [D, ET*H] msg_fc1 (sender)
        w1r = wmsg_ref[mo["w1r"]:mo["w1r"] + D, :]       # bf16 [D, ET*H] msg_fc1 (receiver)
        w2 = wmsg_ref[mo["w2"]:mo["w2"] + ETH, :]        # bf16 [ET*H, ET*H] block-diag msg_fc2
        b1 = wmsg_ref[mo["b1"]:mo["b1"] + 1, :].astype(f32)   # [1, ET*H]
        b2 = wmsg_ref[mo["b2"]:mo["b2"] + 1, :].astype(f32)   # [1, ET*H]

        wo1x = wout_ref[oo["wo1x"]:oo["wo1x"] + D, :]    # bf16 [D, H] out_fc1 (input half)
        wo1a = wout_ref[oo["wo1a"]:oo["wo1a"] + H, :]    # bf16 [H, H] out_fc1 (agg half)
        wo2 = wout_ref[oo["wo2"]:oo["wo2"] + H, :]       # bf16 [H, H]
        wo3 = wout_ref[oo["wo3"]:oo["wo3"] + H, :][:, 0:D]          # bf16 [H, D]
        rsum = wout_ref[oo["rsum"]:oo["rsum"] + ETH, :]  # bf16 [ET*H, H] stacked identity
        bo1 = wout_ref[oo["bo1"]:oo["bo1"] + 1, :].astype(f32)      # [1, H]
        bo2 = wout_ref[oo["bo2"]:oo["bo2"] + 1, :].astype(f32)      # [1, H]
        bo3 = wout_ref[oo["bo3"]:oo["bo3"] + 1, :][:, 0:D].astype(f32)   # [1, D]

        cur = x_ref[0]                              # f32 [Mb*N, D]
        for step in range(pred_steps):              # fused sequential prediction steps
            cb = cur.astype(bf16)

            # project to message space first (lane = ET*H), gather rows second
            p_s = mm(cb, w1s)                       # f32 [MbN, ET*H]
            p_r = mm(cb, w1r)                       # f32 [MbN, ET*H]
            m = (mm(gat_s, p_s.astype(bf16))
                 + mm(gat_r, p_r.astype(bf16))
                 + b1)                              # f32 [MbE, ET*H]
            m = jnp.maximum(m, 0.0)                 # ReLU (dropout = identity)
            m = mm(m.astype(bf16), w2) + b2
            m = jnp.maximum(m, 0.0)
            m = m * ew                              # edge-type probability weighting (f32)

            # sum over edge types on the MXU (stacked identity) instead of lane slices
            msgs = mm(m.astype(bf16), rsum)         # f32 [MbE, H]
            # aggregate incoming messages per atom: rel_rec^T @ msgs (block-diag)
            agg = mm(aggm, msgs.astype(bf16))       # f32 [MbN, H]

            # output MLP on concat([x, agg], -1) via split matmuls (no concat)
            h = mm(cb, wo1x) + mm(agg.astype(bf16), wo1a) + bo1
            h = jnp.maximum(h, 0.0)
            h = jnp.maximum(mm(h.astype(bf16), wo2) + bo2, 0.0)
            pred = mm(h.astype(bf16), wo3) + bo3    # f32 [MbN, D]

            cur = cur + pred                        # residual: inputs + pred (f32)
            # TODO(synk): lane-dense flattened store skipped (see header note).
            o_ref[0, step] = cur                    # whole-block write, once per step

    return kernel


def decoder_pallas(x_in, gat_s, gat_r, aggm, ew, wmsg, wout,
                   *, Mb, N, D, H, E, ET, pred_steps, G):
    """x_in: [G, Mb*N, D] -> [G, pred_steps, Mb*N, D] (all decoder steps)."""
    MbN, MbE, ETH = Mb * N, Mb * E, ET * H
    kernel = _make_decoder_kernel(Mb, N, D, H, E, ET, pred_steps)
    # "parallel" only matters when a second TensorCore exists (G > 1 on v7x).
    dim_sem = ("parallel",) if G > 1 else ("arbitrary",)
    return pl.pallas_call(
        kernel,
        out_shape=jax.ShapeDtypeStruct((G, pred_steps, MbN, D), jnp.float32),
        grid=(G,),
        in_specs=[
            pl.BlockSpec((1, MbN, D), lambda i: (i, 0, 0)),        # x slab block (f32)
            pl.BlockSpec((MbE, MbN), lambda i: (0, 0)),            # send gather (bf16)
            pl.BlockSpec((MbE, MbN), lambda i: (0, 0)),            # recv gather (bf16)
            pl.BlockSpec((MbN, MbE), lambda i: (0, 0)),            # aggregation (bf16)
            pl.BlockSpec((MbE, ETH), lambda i: (0, 0)),            # edge weights (f32)
            pl.BlockSpec(wmsg.shape, lambda i: (0, 0)),            # packed msg MLP (bf16)
            pl.BlockSpec(wout.shape, lambda i: (0, 0)),            # packed out MLP (bf16)
        ],
        out_specs=pl.BlockSpec((1, pred_steps, MbN, D), lambda i: (i, 0, 0, 0)),
        compiler_params=pltpu.CompilerParams(dimension_semantics=dim_sem),
    )(x_in, gat_s, gat_r, aggm, ew, wmsg, wout)


# ----------------------------------------------------------------------------
# Wrapper-side operand packing (weights -> bf16 for single-pass MXU feeding)
# ----------------------------------------------------------------------------
def _pack_weights(params, D, H, ET):
    ETH = ET * H
    mo = _msg_offsets(D, ETH)
    oo = _out_offsets(D, H, ETH)

    w1, b1 = params["w1"], params["b1"]          # [ET, 2D, H], [ET, 1, H]
    w2, b2 = params["w2"], params["b2"]          # [ET, H, H],  [ET, 1, H]

    w1s = jnp.concatenate([w1[t, :D, :] for t in range(ET)], axis=1)   # [D, ET*H]
    w1r = jnp.concatenate([w1[t, D:, :] for t in range(ET)], axis=1)   # [D, ET*H]
    w2bd = jax.scipy.linalg.block_diag(*[w2[t] for t in range(ET)])    # [ET*H, ET*H]
    b1p = jnp.concatenate([b1[t, 0] for t in range(ET)], axis=0)       # [ET*H]
    b2p = jnp.concatenate([b2[t, 0] for t in range(ET)], axis=0)       # [ET*H]

    wmsg = jnp.zeros((mo["rows"], ETH), jnp.float32)
    wmsg = wmsg.at[mo["w1s"]:mo["w1s"] + D].set(w1s)
    wmsg = wmsg.at[mo["w1r"]:mo["w1r"] + D].set(w1r)
    wmsg = wmsg.at[mo["w2"]:mo["w2"] + ETH].set(w2bd)
    wmsg = wmsg.at[mo["b1"]].set(b1p)
    wmsg = wmsg.at[mo["b2"]].set(b2p)

    rsum = jnp.tile(jnp.eye(H, dtype=jnp.float32), (ET, 1))            # [ET*H, H]

    wout = jnp.zeros((oo["rows"], H), jnp.float32)
    wout = wout.at[oo["wo1x"]:oo["wo1x"] + D].set(params["wo1"][:D])
    wout = wout.at[oo["wo1a"]:oo["wo1a"] + H].set(params["wo1"][D:])
    wout = wout.at[oo["wo2"]:oo["wo2"] + H].set(params["wo2"])
    wout = wout.at[oo["wo3"]:oo["wo3"] + H, 0:D].set(params["wo3"])
    wout = wout.at[oo["rsum"]:oo["rsum"] + ETH].set(rsum)
    wout = wout.at[oo["bo1"]].set(params["bo1"][0])
    wout = wout.at[oo["bo2"]].set(params["bo2"][0])
    wout = wout.at[oo["bo3"], 0:D].set(params["bo3"][0])

    return wmsg.astype(jnp.bfloat16), wout.astype(jnp.bfloat16)


def build_gather_matrices(rel_rec, rel_send, Mb):
    """Block-diagonal (over Mb timestep slabs) one-hot gather / aggregation matrices.

    Hoisted out of the per-call jitted forward: depends only on the graph and Mb.
    Exact in bf16 (0/1 entries).
    """
    eye = jnp.eye(Mb, dtype=jnp.float32)
    gat_s = jnp.kron(eye, rel_send)              # [Mb*E, Mb*N]
    gat_r = jnp.kron(eye, rel_rec)               # [Mb*E, Mb*N]
    aggm = jnp.kron(eye, rel_rec.T)              # [Mb*N, Mb*E]
    # TODO(synk): O(Mb^2) dense; for production-size B*Tp add a slab grid axis so
    #             VMEM stays linear in Mb (v7x: 64 MiB VMEM, 32 MiB default scoped).
    vmem_bytes = 2 * (gat_s.size + gat_r.size + aggm.size)
    assert vmem_bytes < 8 * 1024 * 1024, (
        "dense block-diag gather matrices too large; switch to a per-slab grid")
    return (gat_s.astype(jnp.bfloat16), gat_r.astype(jnp.bfloat16),
            aggm.astype(jnp.bfloat16))


def _tensorcores_per_chip():
    """2 TensorCores only on v7x-class chips; v5e/v6e have 1 (slab split is pure
    overhead there)."""
    try:
        kind = jax.local_devices()[0].device_kind.lower()
    except Exception:
        return 1
    return 2 if "v7" in kind else 1


def _gumbel_softmax(logits, tau, key):
    u = jax.random.uniform(key, logits.shape, minval=1e-10, maxval=1.0 - 1e-10)
    g = -jnp.log(-jnp.log(u))
    return jax.nn.softmax((logits + g) / tau, axis=-1)


# ----------------------------------------------------------------------------
# Full MLPDecoder_Causal.forward (glue jit'ed, hot path in one Pallas call).
# ----------------------------------------------------------------------------
@functools.partial(jax.jit, static_argnames=("pred_steps", "start_idx", "G"))
def mlp_decoder_causal_forward(inputs, params, gat_s, gat_r, aggm, gumbel_key, tau,
                               *, pred_steps, start_idx, G):
    """inputs: [B, N, T, D]  (PyTorch convention before .transpose(1, 2))."""
    B, N, T, D = inputs.shape
    ET = params["rel_graph"].shape[-1]
    E = params["rel_graph"].shape[2]
    H = params["wo2"].shape[0]
    assert pred_steps <= T

    # edges = gumbel_softmax(rel_graph, tau, hard=False)
    edges = _gumbel_softmax(params["rel_graph"], tau, gumbel_key)[0, 0]     # [E, ET]

    x = jnp.transpose(inputs, (0, 2, 1, 3))          # [B, T, N, D]
    last_pred = x[:, 0::pred_steps]                  # [B, Tp, N, D]
    Tp = last_pred.shape[1]
    M = B * Tp
    assert M % G == 0
    Mb = M // G

    # ---- kernel operands (gather matrices come in precomputed) -------------
    x_in = last_pred.reshape(G, Mb * N, D)
    mask = (jnp.arange(ET) >= start_idx).astype(jnp.float32)      # skip_first_edge_type
    ew = jnp.tile(jnp.repeat(edges * mask[None, :], H, axis=1), (Mb, 1))  # [Mb*E, ET*H]
    wmsg, wout = _pack_weights(params, D, H, ET)

    out = decoder_pallas(x_in, gat_s, gat_r, aggm, ew, wmsg, wout,
                         Mb=Mb, N=N, D=D, H=H, E=E, ET=ET,
                         pred_steps=pred_steps, G=G)              # [G, P, Mb*N, D]

    # un-flatten + interleave:  output[:, i::pred_steps] = preds[i]
    preds = out.reshape(G, pred_steps, Mb, N, D)
    preds = jnp.transpose(preds, (0, 2, 1, 3, 4)).reshape(B, Tp * pred_steps, N, D)
    pred_all = preds[:, :T - 1]                                   # [B, T-1, N, D]

    out0 = jnp.transpose(pred_all, (0, 2, 1, 3))                  # [B, N, T-1, D]
    out1 = jnp.broadcast_to(params["rel_graph"][:, 0], (B, E, ET))
    return out0, out1, None


# ----------------------------------------------------------------------------
# Pure-JAX reference (mirrors the PyTorch module) for correctness checking.
# ----------------------------------------------------------------------------
def _reference_forward(inputs, params, rel_rec, rel_send, edges, pred_steps, start_idx):
    hp = jax.lax.Precision.HIGHEST
    B, N, T, D = inputs.shape
    H = params["wo2"].shape[0]
    ET = edges.shape[-1]
    x = jnp.transpose(inputs, (0, 2, 1, 3))
    last = x[:, 0::pred_steps]
    preds = []
    for _ in range(pred_steps):
        recv = jnp.einsum("en,btnd->bted", rel_rec, last, precision=hp)
        send = jnp.einsum("en,btnd->bted", rel_send, last, precision=hp)
        pre = jnp.concatenate([send, recv], axis=-1)
        allm = jnp.zeros(pre.shape[:-1] + (H,), jnp.float32)
        for i in range(start_idx, ET):
            m = jax.nn.relu(jnp.einsum("bted,dh->bteh", pre, params["w1"][i],
                                       precision=hp) + params["b1"][i])
            m = jax.nn.relu(jnp.einsum("bteh,hk->btek", m, params["w2"][i],
                                       precision=hp) + params["b2"][i])
            allm = allm + m * edges[None, None, :, i:i + 1]
        agg = jnp.einsum("en,bteh->btnh", rel_rec, allm, precision=hp)
        aug = jnp.concatenate([last, agg], axis=-1)
        h = jax.nn.relu(jnp.einsum("btnd,dh->btnh", aug, params["wo1"],
                                   precision=hp) + params["bo1"])
        h = jax.nn.relu(jnp.einsum("btnh,hk->btnk", h, params["wo2"],
                                   precision=hp) + params["bo2"])
        pred = jnp.einsum("btnh,hd->btnd", h, params["wo3"], precision=hp) + params["bo3"]
        last = last + pred
        preds.append(last)
    Tp = preds[0].shape[1]
    output = jnp.stack(preds, axis=2).reshape(B, Tp * pred_steps, N, D)
    return jnp.transpose(output[:, :T - 1], (0, 2, 1, 3))


# ----------------------------------------------------------------------------
# Deterministic parameter / relation-matrix construction
# ----------------------------------------------------------------------------
def init_params(key, num_atoms, dims, hidden, edge_types):
    E = num_atoms * (num_atoms - 1)
    keys = jax.random.split(key, 12)

    def lin(k, fan_in, shape):
        bound = 1.0 / jnp.sqrt(float(fan_in))
        return jax.random.uniform(k, shape, jnp.float32, -bound, bound)

    return {
        "rel_graph": jax.random.normal(keys[0], (1, 1, E, edge_types), jnp.float32)
                     * jnp.sqrt(2.0 / (2.0 * E * edge_types)),
        "w1": lin(keys[1], 2 * dims, (edge_types, 2 * dims, hidden)),
        "b1": lin(keys[2], 2 * dims, (edge_types, 1, hidden)),
        "w2": lin(keys[3], hidden, (edge_types, hidden, hidden)),
        "b2": lin(keys[4], hidden, (edge_types, 1, hidden)),
        "wo1": lin(keys[5], dims + hidden, (dims + hidden, hidden)),
        "bo1": lin(keys[6], dims + hidden, (1, hidden)),
        "wo2": lin(keys[7], hidden, (hidden, hidden)),
        "bo2": lin(keys[8], hidden, (1, hidden)),
        "wo3": lin(keys[9], hidden, (hidden, dims)),
        "bo3": lin(keys[10], hidden, (1, dims)),
    }


def make_rel_matrices(num_atoms):
    """NRI-style one-hot rel_rec / rel_send over off-diagonal atom pairs."""
    eye = jnp.eye(num_atoms, dtype=jnp.float32)
    off = jnp.ones((num_atoms, num_atoms)) - jnp.eye(num_atoms)
    recv_idx, send_idx = jnp.where(off > 0, size=num_atoms * (num_atoms - 1))
    return eye[recv_idx], eye[send_idx]           # [E, N], [E, N]


if __name__ == "__main__":
    # args: num_atoms=5, dims=8, decoder_hidden=32, edge_types=2,
    #       prediction_steps=2, temp=0.5, skip_first=False, decoder_dropout=0.
    B, N, T, D = 2, 5, 8, 8
    H, ET, PRED_STEPS = 32, 2, 2
    TAU = 0.5
    START_IDX = 0          # skip_first_edge_type = False

    root = jax.random.PRNGKey(0)
    k_param, k_in, k_gumbel = jax.random.split(root, 3)

    params = init_params(k_param, N, D, H, ET)
    rel_rec, rel_send = make_rel_matrices(N)

    # inputs in PyTorch convention: [batch, num_atoms, time_steps, dims]
    x = jax.random.normal(k_in, (B, N, T, D), jnp.float32)

    # static slab-split factor: split only when a second TensorCore exists (v7x)
    Tp = -(-T // PRED_STEPS)
    M = B * Tp
    G = 2 if (_tensorcores_per_chip() == 2 and M % 2 == 0) else 1
    Mb = M // G

    # hoisted out of the jitted forward: depends only on the graph and Mb
    gat_s, gat_r, aggm = build_gather_matrices(rel_rec, rel_send, Mb)

    pred_all, rel_graph_out, _ = mlp_decoder_causal_forward(
        x, params, gat_s, gat_r, aggm, k_gumbel, TAU,
        pred_steps=PRED_STEPS, start_idx=START_IDX, G=G)
    jax.block_until_ready(pred_all)
    jax.block_until_ready(rel_graph_out)

    assert pred_all.shape == (B, N, T - 1, D), pred_all.shape
    assert rel_graph_out.shape == (B, N * (N - 1), ET), rel_graph_out.shape

    # correctness vs pure-JAX f32 reference (same gumbel key -> identical edges).
    # Tolerance is looser than rev 2's 1e-2 because matmul operands are now fed
    # to the MXU in bf16 (f32 accumulation) per the performance review.
    edges = _gumbel_softmax(params["rel_graph"], TAU, k_gumbel)[0, 0]
    ref = _reference_forward(x, params, rel_rec, rel_send, edges, PRED_STEPS, START_IDX)
    np.testing.assert_allclose(np.asarray(pred_all), np.asarray(ref),
                               rtol=5e-2, atol=5e-2)

    print("KERNEL_OK")
</pallas_src>

<mosaic_0001>
module attributes {stable_mosaic.version = 11 : i64} {
  func.func @kernel(%arg0: i32, %arg1: memref<1x40x8xf32, #tpu.memory_space<vmem>>, %arg2: memref<160x40xbf16, #tpu.memory_space<vmem>>, %arg3: memref<160x40xbf16, #tpu.memory_space<vmem>>, %arg4: memref<40x160xbf16, #tpu.memory_space<vmem>>, %arg5: memref<160x64xf32, #tpu.memory_space<vmem>>, %arg6: memref<96x64xbf16, #tpu.memory_space<vmem>>, %arg7: memref<192x32xbf16, #tpu.memory_space<vmem>>, %arg8: memref<1x2x40x8xf32, #tpu.memory_space<vmem>>) attributes {dimension_semantics = [#tpu.dimension_semantics<arbitrary>], iteration_bounds = array<i64: 1>, scalar_prefetch = 0 : i64, scratch_operands = 0 : i64, tpu.core_type = #tpu.core_type<tc>, window_params = [{transform_indices = @transform_0, window_bounds = array<i64: 1, 40, 8>}, {pipeline_mode = #tpu.pipeline_mode<synchronous>, transform_indices = @transform_1, window_bounds = array<i64: 160, 40>}, {pipeline_mode = #tpu.pipeline_mode<synchronous>, transform_indices = @transform_2, window_bounds = array<i64: 160, 40>}, {pipeline_mode = #tpu.pipeline_mode<synchronous>, transform_indices = @transform_3, window_bounds = array<i64: 40, 160>}, {pipeline_mode = #tpu.pipeline_mode<synchronous>, transform_indices = @transform_4, window_bounds = array<i64: 160, 64>}, {pipeline_mode = #tpu.pipeline_mode<synchronous>, transform_indices = @transform_5, window_bounds = array<i64: 96, 64>}, {pipeline_mode = #tpu.pipeline_mode<synchronous>, transform_indices = @transform_6, window_bounds = array<i64: 192, 32>}, {transform_indices = @transform_7, window_bounds = array<i64: 1, 2, 40, 8>}]} {
    %c0 = arith.constant 0 : index
    %c0_0 = arith.constant 0 : index
    %0 = vector.load %arg2[%c0, %c0_0] : memref<160x40xbf16, #tpu.memory_space<vmem>>, vector<160x40xbf16>
    %c0_1 = arith.constant 0 : index
    %c0_2 = arith.constant 0 : index
    %1 = vector.load %arg3[%c0_1, %c0_2] : memref<160x40xbf16, #tpu.memory_space<vmem>>, vector<160x40xbf16>
    %c0_3 = arith.constant 0 : index
    %c0_4 = arith.constant 0 : index
    %2 = vector.load %arg4[%c0_3, %c0_4] : memref<40x160xbf16, #tpu.memory_space<vmem>>, vector<40x160xbf16>
    %c0_5 = arith.constant 0 : index
    %c0_6 = arith.constant 0 : index
    %3 = vector.load %arg5[%c0_5, %c0_6] : memref<160x64xf32, #tpu.memory_space<vmem>>, vector<160x64xf32>
    %c0_7 = arith.constant 0 : index
    %c0_8 = arith.constant 0 : index
    %4 = vector.load %arg6[%c0_7, %c0_8] : memref<96x64xbf16, #tpu.memory_space<vmem>>, vector<8x64xbf16>
    %c8 = arith.constant 8 : index
    %c0_9 = arith.constant 0 : index
    %5 = vector.load %arg6[%c8, %c0_9] : memref<96x64xbf16, #tpu.memory_space<vmem>>, vector<8x64xbf16>
    %c16 = arith.constant 16 : index
    %c0_10 = arith.constant 0 : index
    %6 = vector.load %arg6[%c16, %c0_10] : memref<96x64xbf16, #tpu.memory_space<vmem>>, vector<64x64xbf16>
    %c80 = arith.constant 80 : index
    %c0_11 = arith.constant 0 : index
    %7 = vector.load %arg6[%c80, %c0_11] : memref<96x64xbf16, #tpu.memory_space<vmem>>, vector<1x64xbf16>
    %8 = arith.extf %7 : vector<1x64xbf16> to vector<1x64xf32>
    %c88 = arith.constant 88 : index
    %c0_12 = arith.constant 0 : index
    %9 = vector.load %arg6[%c88, %c0_12] : memref<96x64xbf16, #tpu.memory_space<vmem>>, vector<1x64xbf16>
    %10 = arith.extf %9 : vector<1x64xbf16> to vector<1x64xf32>
    %c0_13 = arith.constant 0 : index
    %c0_14 = arith.constant 0 : index
    %11 = vector.load %arg7[%c0_13, %c0_14] : memref<192x32xbf16, #tpu.memory_space<vmem>>, vector<8x32xbf16>
    %c8_15 = arith.constant 8 : index
    %c0_16 = arith.constant 0 : index
    %12 = vector.load %arg7[%c8_15, %c0_16] : memref<192x32xbf16, #tpu.memory_space<vmem>>, vector<32x32xbf16>
    %c40 = arith.constant 40 : index
    %c0_17 = arith.constant 0 : index
    %13 = vector.load %arg7[%c40, %c0_17] : memref<192x32xbf16, #tpu.memory_space<vmem>>, vector<32x32xbf16>
    %c72 = arith.constant 72 : index
    %c0_18 = arith.constant 0 : index
    %14 = vector.load %arg7[%c72, %c0_18] : memref<192x32xbf16, #tpu.memory_space<vmem>>, vector<32x32xbf16>
    %15 = vector.extract_strided_slice %14 {offsets = [0, 0], sizes = [32, 8], strides = [1, 1]} : vector<32x32xbf16> to vector<32x8xbf16>
    %c104 = arith.constant 104 : index
    %c0_19 = arith.constant 0 : index
    %16 = vector.load %arg7[%c104, %c0_19] : memref<192x32xbf16, #tpu.memory_space<vmem>>, vector<64x32xbf16>
    %c168 = arith.constant 168 : index
    %c0_20 = arith.constant 0 : index
    %17 = vector.load %arg7[%c168, %c0_20] : memref<192x32xbf16, #tpu.memory_space<vmem>>, vector<1x32xbf16>
    %18 = arith.extf %17 : vector<1x32xbf16> to vector<1x32xf32>
    %c176 = arith.constant 176 : index
    %c0_21 = arith.constant 0 : index
    %19 = vector.load %arg7[%c176, %c0_21] : memref<192x32xbf16, #tpu.memory_space<vmem>>, vector<1x32xbf16>
    %20 = arith.extf %19 : vector<1x32xbf16> to vector<1x32xf32>
    %c184 = arith.constant 184 : index
    %c0_22 = arith.constant 0 : index
    %21 = vector.load %arg7[%c184, %c0_22] : memref<192x32xbf16, #tpu.memory_space<vmem>>, vector<1x32xbf16>
    %22 = vector.extract_strided_slice %21 {offsets = [0, 0], sizes = [1, 8], strides = [1, 1]} : vector<1x32xbf16> to vector<1x8xbf16>
    %23 = arith.extf %22 : vector<1x8xbf16> to vector<1x8xf32>
    %c0_23 = arith.constant 0 : index
    %c0_24 = arith.constant 0 : index
    %c0_25 = arith.constant 0 : index
    %24 = vector.load %arg1[%c0_23, %c0_24, %c0_25] : memref<1x40x8xf32, #tpu.memory_space<vmem>>, vector<1x40x8xf32>
    %25 = vector.shape_cast %24 : vector<1x40x8xf32> to vector<40x8xf32>
    %26 = arith.truncf %25 : vector<40x8xf32> to vector<40x8xbf16>
    %cst = arith.constant dense<0.000000e+00> : vector<40x64xf32>
    %27 = tpu.matmul %26, %4, %cst {dimension_numbers = #tpu.dot_dimension_numbers<[1], [0], [0], [1], [0, 0, 1, 1], [], []>} : vector<40x8xbf16>, vector<8x64xbf16>, vector<40x64xf32> -> vector<40x64xf32>
    %cst_26 = arith.constant dense<0.000000e+00> : vector<40x64xf32>
    %28 = tpu.matmul %26, %5, %cst_26 {dimension_numbers = #tpu.dot_dimension_numbers<[1], [0], [0], [1], [0, 0, 1, 1], [], []>} : vector<40x8xbf16>, vector<8x64xbf16>, vector<40x64xf32> -> vector<40x64xf32>
    %29 = arith.truncf %27 : vector<40x64xf32> to vector<40x64xbf16>
    %cst_27 = arith.constant dense<0.000000e+00> : vector<160x64xf32>
    %30 = tpu.matmul %0, %29, %cst_27 {dimension_numbers = #tpu.dot_dimension_numbers<[1], [0], [0], [1], [0, 0, 1, 1], [], []>} : vector<160x40xbf16>, vector<40x64xbf16>, vector<160x64xf32> -> vector<160x64xf32>
    %31 = arith.truncf %28 : vector<40x64xf32> to vector<40x64xbf16>
    %cst_28 = arith.constant dense<0.000000e+00> : vector<160x64xf32>
    %32 = tpu.matmul %1, %31, %cst_28 {dimension_numbers = #tpu.dot_dimension_numbers<[1], [0], [0], [1], [0, 0, 1, 1], [], []>} : vector<160x40xbf16>, vector<40x64xbf16>, vector<160x64xf32> -> vector<160x64xf32>
    %33 = arith.addf %30, %32 : vector<160x64xf32>
    %34 = vector.broadcast %8 : vector<1x64xf32> to vector<160x64xf32>
    %35 = arith.addf %33, %34 : vector<160x64xf32>
    %cst_29 = arith.constant 0.000000e+00 : f32
    %36 = vector.broadcast %cst_29 : f32 to vector<160x64xf32>
    %37 = arith.maximumf %35, %36 : vector<160x64xf32>
    %38 = arith.truncf %37 : vector<160x64xf32> to vector<160x64xbf16>
    %cst_30 = arith.constant dense<0.000000e+00> : vector<160x64xf32>
    %39 = tpu.matmul %38, %6, %cst_30 {dimension_numbers = #tpu.dot_dimension_numbers<[1], [0], [0], [1], [0, 0, 1, 1], [], []>} : vector<160x64xbf16>, vector<64x64xbf16>, vector<160x64xf32> -> vector<160x64xf32>
    %40 = vector.broadcast %10 : vector<1x64xf32> to vector<160x64xf32>
    %41 = arith.addf %39, %40 : vector<160x64xf32>
    %cst_31 = arith.constant 0.000000e+00 : f32
    %42 = vector.broadcast %cst_31 : f32 to vector<160x64xf32>
    %43 = arith.maximumf %41, %42 : vector<160x64xf32>
    %44 = arith.mulf %43, %3 : vector<160x64xf32>
    %45 = arith.truncf %44 : vector<160x64xf32> to vector<160x64xbf16>
    %cst_32 = arith.constant dense<0.000000e+00> : vector<160x32xf32>
    %46 = tpu.matmul %45, %16, %cst_32 {dimension_numbers = #tpu.dot_dimension_numbers<[1], [0], [0], [1], [0, 0, 1, 1], [], []>} : vector<160x64xbf16>, vector<64x32xbf16>, vector<160x32xf32> -> vector<160x32xf32>
    %47 = arith.truncf %46 : vector<160x32xf32> to vector<160x32xbf16>
    %cst_33 = arith.constant dense<0.000000e+00> : vector<40x32xf32>
    %48 = tpu.matmul %2, %47, %cst_33 {dimension_numbers = #tpu.dot_dimension_numbers<[1], [0], [0], [1], [0, 0, 1, 1], [], []>} : vector<40x160xbf16>, vector<160x32xbf16>, vector<40x32xf32> -> vector<40x32xf32>
    %cst_34 = arith.constant dense<0.000000e+00> : vector<40x32xf32>
    %49 = tpu.matmul %26, %11, %cst_34 {dimension_numbers = #tpu.dot_dimension_numbers<[1], [0], [0], [1], [0, 0, 1, 1], [], []>} : vector<40x8xbf16>, vector<8x32xbf16>, vector<40x32xf32> -> vector<40x32xf32>
    %50 = arith.truncf %48 : vector<40x32xf32> to vector<40x32xbf16>
    %cst_35 = arith.constant dense<0.000000e+00> : vector<40x32xf32>
    %51 = tpu.matmul %50, %12, %cst_35 {dimension_numbers = #tpu.dot_dimension_numbers<[1], [0], [0], [1], [0, 0, 1, 1], [], []>} : vector<40x32xbf16>, vector<32x32xbf16>, vector<40x32xf32> -> vector<40x32xf32>
    %52 = arith.addf %49, %51 : vector<40x32xf32>
    %53 = vector.broadcast %18 : vector<1x32xf32> to vector<40x32xf32>
    %54 = arith.addf %52, %53 : vector<40x32xf32>
    %cst_36 = arith.constant 0.000000e+00 : f32
    %55 = vector.broadcast %cst_36 : f32 to vector<40x32xf32>
    %56 = arith.maximumf %54, %55 : vector<40x32xf32>
    %57 = arith.truncf %56 : vector<40x32xf32> to vector<40x32xbf16>
    %cst_37 = arith.constant dense<0.000000e+00> : vector<40x32xf32>
    %58 = tpu.matmul %57, %13, %cst_37 {dimension_numbers = #tpu.dot_dimension_numbers<[1], [0], [0], [1], [0, 0, 1, 1], [], []>} : vector<40x32xbf16>, vector<32x32xbf16>, vector<40x32xf32> -> vector<40x32xf32>
    %59 = vector.broadcast %20 : vector<1x32xf32> to vector<40x32xf32>
    %60 = arith.addf %58, %59 : vector<40x32xf32>
    %cst_38 = arith.constant 0.000000e+00 : f32
    %61 = vector.broadcast %cst_38 : f32 to vector<40x32xf32>
    %62 = arith.maximumf %60, %61 : vector<40x32xf32>
    %63 = arith.truncf %62 : vector<40x32xf32> to vector<40x32xbf16>
    %cst_39 = arith.constant dense<0.000000e+00> : vector<40x8xf32>
    %64 = tpu.matmul %63, %15, %cst_39 {dimension_numbers = #tpu.dot_dimension_numbers<[1], [0], [0], [1], [0, 0, 1, 1], [], []>} : vector<40x32xbf16>, vector<32x8xbf16>, vector<40x8xf32> -> vector<40x8xf32>
    %65 = vector.broadcast %23 : vector<1x8xf32> to vector<40x8xf32>
    %66 = arith.addf %64, %65 : vector<40x8xf32>
    %67 = arith.addf %25, %66 : vector<40x8xf32>
    %c0_40 = arith.constant 0 : index
    %c0_41 = arith.constant 0 : index
    %c0_42 = arith.constant 0 : index
    %c0_43 = arith.constant 0 : index
    %68 = vector.load %arg8[%c0_40, %c0_41, %c0_42, %c0_43] : memref<1x2x40x8xf32, #tpu.memory_space<vmem>>, vector<1x1x40x8xf32>
    %69 = vector.shape_cast %68 : vector<1x1x40x8xf32> to vector<40x8xf32>
    %70 = vector.shape_cast %67 : vector<40x8xf32> to vector<1x1x40x8xf32>
    tpu.vector_store %arg8[%c0_40, %c0_41, %c0_42, %c0_43], %70 {strides = array<i32>} : memref<1x2x40x8xf32, #tpu.memory_space<vmem>>, vector<1x1x40x8xf32>,
    %71 = arith.truncf %67 : vector<40x8xf32> to vector<40x8xbf16>
    %cst_44 = arith.constant dense<0.000000e+00> : vector<40x64xf32>
    %72 = tpu.matmul %71, %4, %cst_44 {dimension_numbers = #tpu.dot_dimension_numbers<[1], [0], [0], [1], [0, 0, 1, 1], [], []>} : vector<40x8xbf16>, vector<8x64xbf16>, vector<40x64xf32> -> vector<40x64xf32>
    %cst_45 = arith.constant dense<0.000000e+00> : vector<40x64xf32>
    %73 = tpu.matmul %71, %5, %cst_45 {dimension_numbers = #tpu.dot_dimension_numbers<[1], [0], [0], [1], [0, 0, 1, 1], [], []>} : vector<40x8xbf16>, vector<8x64xbf16>, vector<40x64xf32> -> vector<40x64xf32>
    %74 = arith.truncf %72 : vector<40x64xf32> to vector<40x64xbf16>
    %cst_46 = arith.constant dense<0.000000e+00> : vector<160x64xf32>
    %75 = tpu.matmul %0, %74, %cst_46 {dimension_numbers = #tpu.dot_dimension_numbers<[1], [0], [0], [1], [0, 0, 1, 1], [], []>} : vector<160x40xbf16>, vector<40x64xbf16>, vector<160x64xf32> -> vector<160x64xf32>
    %76 = arith.truncf %73 : vector<40x64xf32> to vector<40x64xbf16>
    %cst_47 = arith.constant dense<0.000000e+00> : vector<160x64xf32>
    %77 = tpu.matmul %1, %76, %cst_47 {dimension_numbers = #tpu.dot_dimension_numbers<[1], [0], [0], [1], [0, 0, 1, 1], [], []>} : vector<160x40xbf16>, vector<40x64xbf16>, vector<160x64xf32> -> vector<160x64xf32>
    %78 = arith.addf %75, %77 : vector<160x64xf32>
    %79 = vector.broadcast %8 : vector<1x64xf32> to vector<160x64xf32>
    %80 = arith.addf %78, %79 : vector<160x64xf32>
    %cst_48 = arith.constant 0.000000e+00 : f32
    %81 = vector.broadcast %cst_48 : f32 to vector<160x64xf32>
    %82 = arith.maximumf %80, %81 : vector<160x64xf32>
    %83 = arith.truncf %82 : vector<160x64xf32> to vector<160x64xbf16>
    %cst_49 = arith.constant dense<0.000000e+00> : vector<160x64xf32>
    %84 = tpu.matmul %83, %6, %cst_49 {dimension_numbers = #tpu.dot_dimension_numbers<[1], [0], [0], [1], [0, 0, 1, 1], [], []>} : vector<160x64xbf16>, vector<64x64xbf16>, vector<160x64xf32> -> vector<160x64xf32>
    %85 = vector.broadcast %10 : vector<1x64xf32> to vector<160x64xf32>
    %86 = arith.addf %84, %85 : vector<160x64xf32>
    %cst_50 = arith.constant 0.000000e+00 : f32
    %87 = vector.broadcast %cst_50 : f32 to vector<160x64xf32>
    %88 = arith.maximumf %86, %87 : vector<160x64xf32>
    %89 = arith.mulf %88, %3 : vector<160x64xf32>
    %90 = arith.truncf %89 : vector<160x64xf32> to vector<160x64xbf16>
    %cst_51 = arith.constant dense<0.000000e+00> : vector<160x32xf32>
    %91 = tpu.matmul %90, %16, %cst_51 {dimension_numbers = #tpu.dot_dimension_numbers<[1], [0], [0], [1], [0, 0, 1, 1], [], []>} : vector<160x64xbf16>, vector<64x32xbf16>, vector<160x32xf32> -> vector<160x32xf32>
    %92 = arith.truncf %91 : vector<160x32xf32> to vector<160x32xbf16>
    %cst_52 = arith.constant dense<0.000000e+00> : vector<40x32xf32>
    %93 = tpu.matmul %2, %92, %cst_52 {dimension_numbers = #tpu.dot_dimension_numbers<[1], [0], [0], [1], [0, 0, 1, 1], [], []>} : vector<40x160xbf16>, vector<160x32xbf16>, vector<40x32xf32> -> vector<40x32xf32>
    %cst_53 = arith.constant dense<0.000000e+00> : vector<40x32xf32>
    %94 = tpu.matmul %71, %11, %cst_53 {dimension_numbers = #tpu.dot_dimension_numbers<[1], [0], [0], [1], [0, 0, 1, 1], [], []>} : vector<40x8xbf16>, vector<8x32xbf16>, vector<40x32xf32> -> vector<40x32xf32>
    %95 = arith.truncf %93 : vector<40x32xf32> to vector<40x32xbf16>
    %cst_54 = arith.constant dense<0.000000e+00> : vector<40x32xf32>
    %96 = tpu.matmul %95, %12, %cst_54 {dimension_numbers = #tpu.dot_dimension_numbers<[1], [0], [0], [1], [0, 0, 1, 1], [], []>} : vector<40x32xbf16>, vector<32x32xbf16>, vector<40x32xf32> -> vector<40x32xf32>
    %97 = arith.addf %94, %96 : vector<40x32xf32>
    %98 = vector.broadcast %18 : vector<1x32xf32> to vector<40x32xf32>
    %99 = arith.addf %97, %98 : vector<40x32xf32>
    %cst_55 = arith.constant 0.000000e+00 : f32
    %100 = vector.broadcast %cst_55 : f32 to vector<40x32xf32>
    %101 = arith.maximumf %99, %100 : vector<40x32xf32>
    %102 = arith.truncf %101 : vector<40x32xf32> to vector<40x32xbf16>
    %cst_56 = arith.constant dense<0.000000e+00> : vector<40x32xf32>
    %103 = tpu.matmul %102, %13, %cst_56 {dimension_numbers = #tpu.dot_dimension_numbers<[1], [0], [0], [1], [0, 0, 1, 1], [], []>} : vector<40x32xbf16>, vector<32x32xbf16>, vector<40x32xf32> -> vector<40x32xf32>
    %104 = vector.broadcast %20 : vector<1x32xf32> to vector<40x32xf32>
    %105 = arith.addf %103, %104 : vector<40x32xf32>
    %cst_57 = arith.constant 0.000000e+00 : f32
    %106 = vector.broadcast %cst_57 : f32 to vector<40x32xf32>
    %107 = arith.maximumf %105, %106 : vector<40x32xf32>
    %108 = arith.truncf %107 : vector<40x32xf32> to vector<40x32xbf16>
    %cst_58 = arith.constant dense<0.000000e+00> : vector<40x8xf32>
    %109 = tpu.matmul %108, %15, %cst_58 {dimension_numbers = #tpu.dot_dimension_numbers<[1], [0], [0], [1], [0, 0, 1, 1], [], []>} : vector<40x32xbf16>, vector<32x8xbf16>, vector<40x8xf32> -> vector<40x8xf32>
    %110 = vector.broadcast %23 : vector<1x8xf32> to vector<40x8xf32>
    %111 = arith.addf %109, %110 : vector<40x8xf32>
    %112 = arith.addf %67, %111 : vector<40x8xf32>
    %c0_59 = arith.constant 0 : index
    %c1 = arith.constant 1 : index
    %c0_60 = arith.constant 0 : index
    %c0_61 = arith.constant 0 : index
    %113 = vector.load %arg8[%c0_59, %c1, %c0_60, %c0_61] : memref<1x2x40x8xf32, #tpu.memory_space<vmem>>, vector<1x1x40x8xf32>
    %114 = vector.shape_cast %113 : vector<1x1x40x8xf32> to vector<40x8xf32>
    %115 = vector.shape_cast %112 : vector<40x8xf32> to vector<1x1x40x8xf32>
    tpu.vector_store %arg8[%c0_59, %c1, %c0_60, %c0_61], %115 {strides = array<i32>} : memref<1x2x40x8xf32, #tpu.memory_space<vmem>>, vector<1x1x40x8xf32>,
    return
  }
  func.func @transform_0(%arg0: i32) -> (i32, i32, i32) {
    %c0_i32 = arith.constant 0 : i32
    %c0_i32_0 = arith.constant 0 : i32
    %c0_i32_1 = arith.constant 0 : i32
    return %arg0, %c0_i32, %c0_i32_0 : i32, i32, i32
  }
  func.func @transform_1(%arg0: i32) -> (i32, i32) {
    %c0_i32 = arith.constant 0 : i32
    %c0_i32_0 = arith.constant 0 : i32
    %c0_i32_1 = arith.constant 0 : i32
    return %c0_i32, %c0_i32_0 : i32, i32
  }
  func.func @transform_2(%arg0: i32) -> (i32, i32) {
    %c0_i32 = arith.constant 0 : i32
    %c0_i32_0 = arith.constant 0 : i32
    %c0_i32_1 = arith.constant 0 : i32
    return %c0_i32, %c0_i32_0 : i32, i32
  }
  func.func @transform_3(%arg0: i32) -> (i32, i32) {
    %c0_i32 = arith.constant 0 : i32
    %c0_i32_0 = arith.constant 0 : i32
    %c0_i32_1 = arith.constant 0 : i32
    return %c0_i32, %c0_i32_0 : i32, i32
  }
  func.func @transform_4(%arg0: i32) -> (i32, i32) {
    %c0_i32 = arith.constant 0 : i32
    %c0_i32_0 = arith.constant 0 : i32
    %c0_i32_1 = arith.constant 0 : i32
    return %c0_i32, %c0_i32_0 : i32, i32
  }
  func.func @transform_5(%arg0: i32) -> (i32, i32) {
    %c0_i32 = arith.constant 0 : i32
    %c0_i32_0 = arith.constant 0 : i32
    %c0_i32_1 = arith.constant 0 : i32
    return %c0_i32, %c0_i32_0 : i32, i32
  }
  func.func @transform_6(%arg0: i32) -> (i32, i32) {
    %c0_i32 = arith.constant 0 : i32
    %c0_i32_0 = arith.constant 0 : i32
    %c0_i32_1 = arith.constant 0 : i32
    return %c0_i32, %c0_i32_0 : i32, i32
  }
  func.func @transform_7(%arg0: i32) -> (i32, i32, i32, i32) {
    %c0_i32 = arith.constant 0 : i32
    %c0_i32_0 = arith.constant 0 : i32
    %c0_i32_1 = arith.constant 0 : i32
    %c0_i32_2 = arith.constant 0 : i32
    return %arg0, %c0_i32, %c0_i32_0, %c0_i32_1 : i32, i32, i32, i32
  }
}

</mosaic_0001>

<bundles_post_ra>
// kernel: tile.12
= control target key start
LH: loop header
LB: loop body
LE: loop exit
PB: predicated region body
PF: predicated region fallthrough
CT: control target
= control target key end

     0   :  { %vm3_vm0 = vcmask 523264   ;;  %s344_s0 = inlined_call_operand.vmem [shape: f32[8,20,64], index: 0, kind: input, shape index: {}]   ;;  %s345_s1 = inlined_call_operand.vmem [shape: f32[160,64], index: 1, kind: output, shape index: {}]  }
   0x1   :  { %v2_v0 = vld [vmem:[%s344_s0] sm:$0xff]   ;;  %v120_v1 = vld [vmem:[%s344_s0 + $0x8] sm:$0xff]   ;;  %v122_v2 = vld [vmem:[%s344_s0 + $0x10] sm:$0xf]  }
   0x2   :  { %4 = vst.msk [vmem:[%s345_s1] sm:$0xff] %vm3_vm0, %v2_v0   ;;  %121 = vst.msk [vmem:[%s345_s1 + $0x8] sm:$0xff] %vm3_vm0, %v120_v1   ;;  %v124_v3 = vld [vmem:[%s344_s0 + $0x18] sm:$0xff]   ;;  %v126_v4 = vld [vmem:[%s344_s0 + $0x20] sm:$0xff]  }
   0x3   :  { %123 = vst.msk [vmem:[%s345_s1 + $0x10] sm:$0xf] %vm3_vm0, %v122_v2   ;;  %v128_v5 = vld [vmem:[%s344_s0 + $0x28] sm:$0xf]   ;;  %125 = vst.msk [vmem:[%s345_s1 + $0x14] sm:$0xff] %vm3_vm0, %v124_v3   ;;  %v130_v6 = vld [vmem:[%s344_s0 + $0x30] sm:$0xff]  }
   0x4   :  { %127 = vst.msk [vmem:[%s345_s1 + $0x1c] sm:$0xff] %vm3_vm0, %v126_v4   ;;  %129 = vst.msk [vmem:[%s345_s1 + $0x24] sm:$0xf] %vm3_vm0, %v128_v5   ;;  %v132_v7 = vld [vmem:[%s344_s0 + $0x38] sm:$0xff]   ;;  %v134_v8 = vld [vmem:[%s344_s0 + $0x40] sm:$0xf]  }
   0x5   :  { %131 = vst.msk [vmem:[%s345_s1 + $0x28] sm:$0xff] %vm3_vm0, %v130_v6   ;;  %133 = vst.msk [vmem:[%s345_s1 + $0x30] sm:$0xff] %vm3_vm0, %v132_v7   ;;  %v136_v9 = vld [vmem:[%s344_s0 + $0x48] sm:$0xff]   ;;  %v138_v10 = vld [vmem:[%s344_s0 + $0x50] sm:$0xff]  }
   0x6   :  { %135 = vst.msk [vmem:[%s345_s1 + $0x38] sm:$0xf] %vm3_vm0, %v134_v8   ;;  %v140_v11 = vld [vmem:[%s344_s0 + $0x58] sm:$0xf]   ;;  %137 = vst.msk [vmem:[%s345_s1 + $0x3c] sm:$0xff] %vm3_vm0, %v136_v9   ;;  %v142_v12 = vld [vmem:[%s344_s0 + $0x60] sm:$0xff]  }
   0x7   :  { %139 = vst.msk [vmem:[%s345_s1 + $0x44] sm:$0xff] %vm3_vm0, %v138_v10   ;;  %141 = vst.msk [vmem:[%s345_s1 + $0x4c] sm:$0xf] %vm3_vm0, %v140_v11   ;;  %v144_v13 = vld [vmem:[%s344_s0 + $0x68] sm:$0xff]   ;;  %v146_v14 = vld [vmem:[%s344_s0 + $0x70] sm:$0xf]  }
   0x8   :  { %143 = vst.msk [vmem:[%s345_s1 + $0x50] sm:$0xff] %vm3_vm0, %v142_v12   ;;  %145 = vst.msk [vmem:[%s345_s1 + $0x58] sm:$0xff] %vm3_vm0, %v144_v13   ;;  %v148_v15 = vld [vmem:[%s344_s0 + $0x78] sm:$0xff]   ;;  %v150_v16 = vld [vmem:[%s344_s0 + $0x80] sm:$0xff]  }
   0x9   :  { %147 = vst.msk [vmem:[%s345_s1 + $0x60] sm:$0xf] %vm3_vm0, %v146_v14   ;;  %v152_v17 = vld [vmem:[%s344_s0 + $0x88] sm:$0xf]   ;;  %149 = vst.msk [vmem:[%s345_s1 + $0x64] sm:$0xff] %vm3_vm0, %v148_v15   ;;  %v154_v18 = vld [vmem:[%s344_s0 + $0x90] sm:$0xff]  }
   0xa   :  { %151 = vst.msk [vmem:[%s345_s1 + $0x6c] sm:$0xff] %vm3_vm0, %v150_v16   ;;  %153 = vst.msk [vmem:[%s345_s1 + $0x74] sm:$0xf] %vm3_vm0, %v152_v17   ;;  %v156_v19 = vld [vmem:[%s344_s0 + $0x98] sm:$0xff]   ;;  %v158_v20 = vld [vmem:[%s344_s0 + $0xa0] sm:$0xf]  }
   0xb   :  { %155 = vst.msk [vmem:[%s345_s1 + $0x78] sm:$0xff] %vm3_vm0, %v154_v18   ;;  %157 = vst.msk [vmem:[%s345_s1 + $0x80] sm:$0xff] %vm3_vm0, %v156_v19   ;;  %v160_v21 = vld [vmem:[%s344_s0 + $0xa8] sm:$0xff]   ;;  %v162_v22 = vld [vmem:[%s344_s0 + $0xb0] sm:$0xff]  }
   0xc   :  { %159 = vst.msk [vmem:[%s345_s1 + $0x88] sm:$0xf] %vm3_vm0, %v158_v20   ;;  %v164_v23 = vld [vmem:[%s344_s0 + $0xb8] sm:$0xf]   ;;  %161 = vst.msk [vmem:[%s345_s1 + $0x8c] sm:$0xff] %vm3_vm0, %v160_v21  }
   0xd   :  { %163 = vst.msk [vmem:[%s345_s1 + $0x94] sm:$0xff] %vm3_vm0, %v162_v22   ;;  %165 = vst.msk [vmem:[%s345_s1 + $0x9c] sm:$0xf] %vm3_vm0, %v164_v23  }

// kernel: mlp_decoder_causal_forward.1
= control target key start
LH: loop header
LB: loop body
LE: loop exit
PB: predicated region body
PF: predicated region fallthrough
CT: control target
= control target key end

     0   :  { %vm151_vm0 = vcmask 1043456   ;;  %v3516_v0 = vmov 0.0   ;;  %vm3517_vm1 = vmmov 0   ;;  %vm141_vm2 = vcmask 64512   ;;  %s4474_s5 = inlined_call_operand.vmem [shape: bf16[96,64], index: 5, kind: input, shape index: {}]   ;;  %s4475_s0 = inlined_call_operand.vmem [shape: f32[1,40,8], index: 0, kind: input, shape index: {}]   ;;  %s4476_s2 = inlined_call_operand.vmem [shape: bf16[160,40], index: 2, kind: input, shape index: {}]   ;;  %s4477_s1 = inlined_call_operand.vmem [shape: bf16[160,40], index: 1, kind: input, shape index: {}]   ;;  %s4478_s6 = inlined_call_operand.vmem [shape: bf16[192,32], index: 6, kind: input, shape index: {}]   ;;  %s4479_s4 = inlined_call_operand.vmem [shape: f32[160,64], index: 4, kind: input, shape index: {}]   ;;  %s4480_s3 = inlined_call_operand.vmem [shape: bf16[40,160], index: 3, kind: input, shape index: {}]   ;;  %s4481_s7 = inlined_call_operand.vmem [shape: f32[1,2,40,8], index: 7, kind: output, shape index: {}]  }
   0x1   :  { %2995 = vmatprep.subr.bf16.mxu1 %v3516_v0  ;;  %v93_v1 = vld [vmem:[%s4474_s5 + $0x4] sm:$0xf]  ;;  %2997 = vmatprep.mubr.msk.bf16.mxu1 %vm3517_vm1, %v3516_v0  ;;  %v134_v4 = vld [vmem:[%s4475_s0 + $0x8] sm:$0xff]  ;;  %v92_v6 = vld [vmem:[%s4474_s5] sm:$0xf]  ;;  %vm326_vm3 = vcmask 326656  }
   0x2   :  { %v3566_v2 = vsel %vm151_vm0, %v93_v1, 0  ;;  %v133_v3 = vld [vmem:[%s4475_s0] sm:$0xff]  ;;  %2981 = vmatprep.subr.bf16.mxu0 %v3516_v0  ;;  %2983 = vmatprep.mubr.msk.bf16.mxu0 %vm3517_vm1, %v3516_v0  ;;  %v3584_v7 = vsel %vm151_vm0, %v92_v6, 0  ;;  %v135_v8 = vld [vmem:[%s4475_s0 + $0x10] sm:$0xff]  ;;  %v136_v9 = vld [vmem:[%s4475_s0 + $0x18] sm:$0xff]  ;;  %vm751_vm4 = vcmask 523264  }
   0x3   :  { %2996 = vmatpush3.bf16.msra.mxu1 %v3566_v2  ;;  %v3578_v5 = vpack.c.bf16 %v134_v4, %v133_v3  ;;  %2982 = vmatpush3.bf16.msra.mxu0 %v3584_v7  ;;  %v3601_v10 = vpack.c.bf16 %v136_v9, %v135_v8  ;;  %v137_v11 = vld [vmem:[%s4475_s0 + $0x20] sm:$0xff]  ;;  %v3444_v14 = vld [vmem:[%s4474_s5 + $0x8] sm:$0xff]   ;;  %v3445_v15 = vld [vmem:[%s4474_s5 + $0x10] sm:$0xff]   ;;  %vm1146_vm5 = vcmask 261120  }
   0x4   :  { %v3614_v12 = vpack.c.bf16 %v137_v11, %v137_v11  ;;  %v3424_v13 = vld [vmem:[%s4476_s2] sm:$0xff]   ;;  %3061 = vmatprep.subr.bf16.mxu1 %v3444_v14  ;;  %v3425_v43 = vld [vmem:[%s4476_s2 + $0x8] sm:$0xff]   ;;  %v3426_v45 = vld [vmem:[%s4476_s2 + $0x10] sm:$0xff]   ;;  %v669_v11 = vlaneseq }
   0x5   :  { %v3427_v49 = vld [vmem:[%s4476_s2 + $0x18] sm:$0xff]   ;;  %v3428_v50 = vld [vmem:[%s4476_s2 + $0x20] sm:$0xff]   ;;  %v3429_v52 = vld [vmem:[%s4476_s2 + $0x28] sm:$0xff]  }
   0x6   :  { %2998 = vmatmul.mubr.msk.bf16.vlgmr.msra.gmra.mrb[0].mxu1 %vm141_vm2, %v3578_v5  ;;  %2984 = vmatmul.mubr.msk.bf16.vlgmr.msra.gmra.mrb[0].mxu0 %vm141_vm2, %v3578_v5  ;;  %v3430_v53 = vld [vmem:[%s4476_s2 + $0x30] sm:$0xff]   ;;  %v3431_v54 = vld [vmem:[%s4476_s2 + $0x38] sm:$0xff]   ;;  %v3432_v55 = vld [vmem:[%s4476_s2 + $0x40] sm:$0xff]  }
   0x7   :  { %3001 = vmatprep.mubr.msk.bf16.mxu1 %vm3517_vm1, %v3516_v0  ;;  %2987 = vmatprep.mubr.msk.bf16.mxu0 %vm3517_vm1, %v3516_v0  ;;  %v3433_v56 = vld [vmem:[%s4476_s2 + $0x48] sm:$0xff]   ;;  %v3434_v57 = vld [vmem:[%s4477_s1] sm:$0xff]   ;;  %v3436_v59 = vld [vmem:[%s4477_s1 + $0x10] sm:$0xff]  }
   0x8   :  { %3062 = vmatpush3.bf16.msra.mxu1 %v3444_v14  ;;  %v3435_v58 = vld [vmem:[%s4477_s1 + $0x8] sm:$0xff]   ;;  %v3437_v60 = vld [vmem:[%s4477_s1 + $0x18] sm:$0xff]   ;;  %v3438_v61 = vld [vmem:[%s4477_s1 + $0x20] sm:$0xff]  }
   0x9   :  { %3063 = vmatprep.subr.bf16.mxu1 %v3445_v15  ;;  %v3439_v62 = vld [vmem:[%s4477_s1 + $0x28] sm:$0xff]   ;;  %v3440_v63 = vld [vmem:[%s4477_s1 + $0x30] sm:$0xff]   ;;  %v3441_v1 = vld [vmem:[%s4477_s1 + $0x38] sm:$0xff]  }
   0xa   :  { %v3442_v3 = vld [vmem:[%s4477_s1 + $0x40] sm:$0xff]   ;;  %v3443_v4 = vld [vmem:[%s4477_s1 + $0x48] sm:$0xff]   ;;  %v3713_v6 = vld [vmem:[%s4474_s5 + $0x18] sm:$0xff]  }
   0xb   :  { %v3720_v8 = vld [vmem:[%s4474_s5 + $0x20] sm:$0xff]   ;;  %v3727_v9 = vld [vmem:[%s4478_s6 + $0x34] sm:$0xff]   ;;  %v102_v14 = vld [vmem:[%s4474_s5 + $0x28] sm:$0x1] }
   0xc   :  { %3064 = vmatpush3.bf16.msra.mxu1 %v3445_v15  ;;  %v103_v15 = vunpack.c.l.bf16 %v102_v14 }
   0xd   :  { %3065 = vmatprep.subr.bf16.mxu1 %v3713_v6 }
   0xe   :  { %3002 = vmatmul.mubr.msk.bf16.gmra.mrb[4].mxu1 %vm141_vm2, %v3601_v10  ;;  %2988 = vmatmul.mubr.msk.bf16.gmra.mrb[4].mxu0 %vm141_vm2, %v3601_v10 }
   0xf   :  { %3005 = vmatprep.mubr.msk.bf16.mxu1 %vm3517_vm1, %v3516_v0  ;;  %2991 = vmatprep.mubr.msk.bf16.mxu0 %vm3517_vm1, %v3516_v0 }
  0x10   :  { %3066 = vmatpush3.bf16.msra.mxu1 %v3713_v6 }
  0x11   :  { %3067 = vmatprep.subr.bf16.mxu1 %v3720_v8 }
  0x14   :  { %3068 = vmatpush3.bf16.msra.mxu1 %v3720_v8 }
  0x15   :  { %3089 = vmatprep.subr.bf16.mxu1 %v3727_v9 }
  0x16   :  { %3006 = vmatmul.mubr.msk.bf16.gmra.mrb[8].mxu1 %vm141_vm2, %v3614_v12  ;;  %2992 = vmatmul.mubr.msk.bf16.gmra.mrb[8].mxu0 %vm141_vm2, %v3614_v12 }
  0x17   :  { %3015 = vmatprep.mubr.msk.bf16.mxu0 %vm326_vm3, %v3424_v13  ;;  %v670_v13 = vshrl.u32 %v669_v11, 7 }
  0xd9   :  { %v248_v16 = vpop.f32.mrb[0].mxu1  ;;  %v189_v19 = vpop.f32.mrb[0].mxu0 }
  0xda   :  { %v2999_v17 = vpop.f32.mrb[1].mxu1  ;;  %v2985_v22 = vpop.f32.mrb[1].mxu0 }
  0xdb   :  { %v251_v18 = vpop.f32.mrb[2].mxu1  ;;  %v192_v23 = vpop.f32.mrb[2].mxu0 }
  0xdc   :  { %v273_v20 = vpack.c.bf16 %v251_v18, %v248_v16  ;;  %v3000_v21 = vpop.f32.mrb[3].mxu1  ;;  %v270_v24 = vpack.c.bf16 %v192_v23, %v189_v19  ;;  %v2986_v25 = vpop.f32.mrb[3].mxu0  ;;  %v3733_v16 = vsub.s32 0, %v670_v13 }
  0xde   :  { %3009 = vmatprep.subr.bf16.mxu0 %v273_v20  ;;  %v3736_v17 = vrot.slane %v103_v15, %v3733_v16 }
  0xdf   :  { %3010 = vmatpush3.bf16.msra.mxu0 %v273_v20 }
  0xe1   :  { %v256_v26 = vpop.f32.mrb[4].mxu1  ;;  %v197_v29 = vpop.f32.mrb[4].mxu0 }
  0xe2   :  { %v3003_v27 = vpop.f32.mrb[5].mxu1  ;;  %v2989_v32 = vpop.f32.mrb[5].mxu0 }
  0xe3   :  { %v259_v28 = vpop.f32.mrb[6].mxu1  ;;  %v200_v33 = vpop.f32.mrb[6].mxu0 }
  0xe4   :  { %v274_v30 = vpack.c.bf16 %v259_v28, %v256_v26  ;;  %v3004_v31 = vpop.f32.mrb[7].mxu1  ;;  %v271_v34 = vpack.c.bf16 %v200_v33, %v197_v29  ;;  %v2990_v35 = vpop.f32.mrb[7].mxu0 }
  0xe5   :  { %v3449_v35 = vld [vmem:[%s4478_s6 + $0x3c] sm:$0xff]  }
  0xe6   :  { %3011 = vmatprep.subr.bf16.mxu0 %v274_v30 }
  0xe7   :  { %3012 = vmatpush3.bf16.msra.mxu0 %v274_v30 }
  0xe9   :  { %v264_v36 = vpop.f32.mrb[8].mxu1  ;;  %v205_v40 = vpop.f32.mrb[8].mxu0 }
  0xea   :  { %v275_v37 = vpack.c.bf16 %v264_v36, %v264_v36  ;;  %v3007_v38 = vpop.f32.mrb[9].mxu1  ;;  %v2993_v44 = vpop.f32.mrb[9].mxu0  ;;  %v272_v48 = vpack.c.bf16 %v205_v40, %v205_v40 }
  0xeb   :  { %v267_v39 = vpop.f32.mrb[10].mxu1  ;;  %v208_v46 = vpop.f32.mrb[10].mxu0 }
  0xec   :  { %v358_v41 = vsel %vm151_vm0, %v275_v37, 0  ;;  %v3008_v42 = vpop.f32.mrb[11].mxu1  ;;  %3417 = vmatprep.subr.msk.bf16.mxu0 %vm151_vm0, %v275_v37  ;;  %v2994_v47 = vpop.f32.mrb[11].mxu0  ;;  %v554_v51 = vsel %vm151_vm0, %v272_v48, 0 }
  0xed   :  { %3014 = vmatpush3.bf16.msra.mxu0 %v358_v41 }
  0xee   :  { %3035 = vmatprep.subr.bf16.mxu0 %v270_v24 }
  0xf0   :  { %3016 = vmatmul.mubr.msk.bf16.vlgmr.msra.gmra.mrb[12].mxu0 %vm326_vm3, %v3425_v43  ;;  %v3450_v43 = vld [vmem:[%s4478_s6 + $0x44] sm:$0xff]  }
  0xf1   :  { %3036 = vmatpush3.bf16.msra.mxu0 %v270_v24  ;;  %3019 = vmatprep.mubr.msk.bf16.mxu0 %vm326_vm3, %v3426_v45 }
  0xf2   :  { %3037 = vmatprep.subr.bf16.mxu0 %v271_v34 }
  0xf5   :  { %3038 = vmatpush3.bf16.msra.mxu0 %v271_v34 }
  0xf6   :  { %3418 = vmatprep.subr.msk.bf16.mxu0 %vm151_vm0, %v272_v48 }
  0xf8   :  { %3020 = vmatmul.mubr.msk.bf16.gmra.mrb[16].mxu0 %vm326_vm3, %v3427_v49 }
  0xf9   :  { %3023 = vmatprep.mubr.msk.bf16.mxu0 %vm326_vm3, %v3428_v50  ;;  %3040 = vmatpush3.bf16.msra.mxu0 %v554_v51 }
 0x100   :  { %3024 = vmatmul.mubr.msk.bf16.gmra.mrb[20].mxu0 %vm326_vm3, %v3429_v52 }
 0x101   :  { %3027 = vmatprep.mubr.msk.bf16.mxu0 %vm326_vm3, %v3430_v53 }
 0x108   :  { %3028 = vmatmul.mubr.msk.bf16.gmra.mrb[24].mxu0 %vm326_vm3, %v3431_v54 }
 0x109   :  { %3031 = vmatprep.mubr.msk.bf16.mxu0 %vm326_vm3, %v3432_v55 }
 0x110   :  { %3032 = vmatmul.mubr.msk.bf16.gmra.mrb[28].mxu0 %vm326_vm3, %v3433_v56 }
 0x111   :  { %3041 = vmatprep.mubr.msk.bf16.mxu0 %vm326_vm3, %v3434_v57 }
 0x118   :  { %3042 = vmatmul.mubr.msk.bf16.vlgmr.msra.gmra.mrb[12].mxu0 %vm326_vm3, %v3435_v58 }
 0x119   :  { %3045 = vmatprep.mubr.msk.bf16.mxu0 %vm326_vm3, %v3436_v59 }
 0x120   :  { %3046 = vmatmul.mubr.msk.bf16.gmra.mrb[16].mxu0 %vm326_vm3, %v3437_v60 }
 0x121   :  { %3049 = vmatprep.mubr.msk.bf16.mxu0 %vm326_vm3, %v3438_v61 }
 0x128   :  { %3050 = vmatmul.mubr.msk.bf16.gmra.mrb[20].mxu0 %vm326_vm3, %v3439_v62 }
 0x129   :  { %3053 = vmatprep.mubr.msk.bf16.mxu0 %vm326_vm3, %v3440_v63 }
 0x130   :  { %3054 = vmatmul.mubr.msk.bf16.gmra.mrb[24].mxu0 %vm326_vm3, %v3441_v1 }
 0x131   :  { %3057 = vmatprep.mubr.msk.bf16.mxu0 %vm326_vm3, %v3442_v3 }
 0x138   :  { %3058 = vmatmul.mubr.msk.bf16.gmra.mrb[28].mxu0 %vm326_vm3, %v3443_v4 }
 0x1eb   :  { %v3043_v18 = vpop.f32.mrb[12].mxu0 }
 0x1ec   :  { %v675_v19 = vadd.f32 %v3043_v18, %v3736_v17  ;;  %v590_v20 = vpop.f32.mrb[13].mxu0 }
 0x1ed   :  { %v673_v21 = vadd.f32 %v3736_v17, %v590_v20  ;;  %v3044_v22 = vpop.f32.mrb[14].mxu0 }
 0x1ee   :  { %v676_v23 = vadd.f32 %v3044_v22, %v3736_v17  ;;  %v593_v24 = vpop.f32.mrb[15].mxu0  ;;  %v695_v26 = vmax.f32 %v675_v19, 0.0 }
 0x1ef   :  { %v674_v25 = vadd.f32 %v3736_v17, %v593_v24  ;;  %v693_v28 = vmax.f32 %v673_v21, 0.0 }
 0x1f0   :  { %v696_v27 = vmax.f32 %v676_v23, 0.0 }
 0x1f1   :  { %v694_v29 = vmax.f32 %v674_v25, 0.0 }
 0x1f2   :  { %v714_v30 = vpack.c.bf16 %v696_v27, %v695_v26 }
 0x1f3   :  { %v713_v31 = vpack.c.bf16 %v694_v29, %v693_v28  ;;  %v3047_v32 = vpop.f32.mrb[16].mxu0 }
 0x1f4   :  { %v679_v33 = vadd.f32 %v3047_v32, %v3736_v17  ;;  %v606_v34 = vpop.f32.mrb[17].mxu0 }
 0x1f5   :  { %v677_v36 = vadd.f32 %v3736_v17, %v606_v34  ;;  %v3048_v37 = vpop.f32.mrb[18].mxu0  ;;  %3069 = vmatprep.mubr.msk.bf16.mxu1 %vm751_vm4, %v713_v31 }
 0x1f6   :  { %v680_v38 = vadd.f32 %v3048_v37, %v3736_v17  ;;  %v609_v39 = vpop.f32.mrb[19].mxu0  ;;  %3070 = vmatmul.mubr.msk.bf16.vlgmr.msra.gmra.mrb[12].mxu1 %vm751_vm4, %v714_v30  ;;  %v699_v41 = vmax.f32 %v679_v33, 0.0  ;;  %v3778_v37 = vld [vmem:[%s4478_s6 + $0x4c] sm:$0xff]  }
 0x1f7   :  { %v678_v40 = vadd.f32 %v3736_v17, %v609_v39  ;;  %3090 = vmatpush3.bf16.msra.mxu1 %v3727_v9  ;;  %v697_v44 = vmax.f32 %v677_v36, 0.0 }
 0x1f8   :  { %v700_v42 = vmax.f32 %v680_v38, 0.0  ;;  %3091 = vmatprep.subr.bf16.mxu1 %v3449_v35  ;;  %v104_v38 = vld [vmem:[%s4474_s5 + $0x2c] sm:$0x1] }
 0x1f9   :  { %v698_v45 = vmax.f32 %v678_v40, 0.0  ;;  %v105_v39 = vunpack.c.l.bf16 %v104_v38 }
 0x1fa   :  { %v716_v46 = vpack.c.bf16 %v700_v42, %v699_v41 }
 0x1fb   :  { %v715_v47 = vpack.c.bf16 %v698_v45, %v697_v44  ;;  %v3051_v48 = vpop.f32.mrb[20].mxu0  ;;  %3092 = vmatpush3.bf16.msra.mxu1 %v3449_v35  ;;  %v3787_v40 = vrot.slane %v105_v39, %v3733_v16 }
 0x1fc   :  { %v683_v49 = vadd.f32 %v3051_v48, %v3736_v17  ;;  %v622_v50 = vpop.f32.mrb[21].mxu0  ;;  %3093 = vmatprep.subr.bf16.mxu1 %v3450_v43 }
 0x1fd   :  { %v681_v51 = vadd.f32 %v3736_v17, %v622_v50  ;;  %v3052_v52 = vpop.f32.mrb[22].mxu0  ;;  %3073 = vmatprep.mubr.msk.bf16.mxu1 %vm751_vm4, %v715_v47 }
 0x1fe   :  { %v684_v53 = vadd.f32 %v3052_v52, %v3736_v17  ;;  %v625_v54 = vpop.f32.mrb[23].mxu0  ;;  %3074 = vmatmul.mubr.msk.bf16.gmra.mrb[16].mxu1 %vm751_vm4, %v716_v46  ;;  %v703_v56 = vmax.f32 %v683_v49, 0.0  ;;  %v74_v49 = vld [vmem:[%s4479_s4 + $0x10] sm:$0xff] }
 0x1ff   :  { %v682_v55 = vadd.f32 %v3736_v17, %v625_v54  ;;  %3094 = vmatpush3.bf16.msra.mxu1 %v3450_v43  ;;  %v701_v58 = vmax.f32 %v681_v51, 0.0  ;;  %v75_v51 = vld [vmem:[%s4479_s4 + $0x18] sm:$0xff] }
 0x200   :  { %v704_v57 = vmax.f32 %v684_v53, 0.0  ;;  %3095 = vmatprep.subr.bf16.mxu1 %v3778_v37  ;;  %v72_v53 = vld [vmem:[%s4479_s4] sm:$0xff] }
 0x201   :  { %v702_v59 = vmax.f32 %v682_v55, 0.0  ;;  %v73_v55 = vld [vmem:[%s4479_s4 + $0x8] sm:$0xff] }
 0x202   :  { %v718_v60 = vpack.c.bf16 %v704_v57, %v703_v56 }
 0x203   :  { %v717_v61 = vpack.c.bf16 %v702_v59, %v701_v58  ;;  %v3055_v62 = vpop.f32.mrb[24].mxu0  ;;  %3096 = vmatpush3.bf16.msra.mxu1 %v3778_v37 }
 0x204   :  { %v687_v63 = vadd.f32 %v3055_v62, %v3736_v17  ;;  %v638_v1 = vpop.f32.mrb[25].mxu0  ;;  %3117 = vmatprep.subr.bf16.mxu1 %v3516_v0 }
 0x205   :  { %v685_v3 = vadd.f32 %v3736_v17, %v638_v1  ;;  %v3056_v4 = vpop.f32.mrb[26].mxu0  ;;  %3077 = vmatprep.mubr.msk.bf16.mxu1 %vm751_vm4, %v717_v61 }
 0x206   :  { %v688_v11 = vadd.f32 %v3056_v4, %v3736_v17  ;;  %v641_v13 = vpop.f32.mrb[27].mxu0  ;;  %3078 = vmatmul.mubr.msk.bf16.gmra.mrb[20].mxu1 %vm751_vm4, %v718_v60  ;;  %v707_v15 = vmax.f32 %v687_v63, 0.0 }
 0x207   :  { %v686_v14 = vadd.f32 %v3736_v17, %v641_v13  ;;  %v705_v19 = vmax.f32 %v685_v3, 0.0 }
 0x208   :  { %v708_v18 = vmax.f32 %v688_v11, 0.0 }
 0x209   :  { %v706_v20 = vmax.f32 %v686_v14, 0.0 }
 0x20a   :  { %v720_v21 = vpack.c.bf16 %v708_v18, %v707_v15  ;;  %v78_v18 = vld [vmem:[%s4479_s4 + $0x30] sm:$0xff] }
 0x20b   :  { %v719_v22 = vpack.c.bf16 %v706_v20, %v705_v19  ;;  %v3059_v23 = vpop.f32.mrb[28].mxu0  ;;  %v79_v20 = vld [vmem:[%s4479_s4 + $0x38] sm:$0xff] }
 0x20c   :  { %v691_v24 = vadd.f32 %v3059_v23, %v3736_v17  ;;  %v654_v25 = vpop.f32.mrb[29].mxu0 }
 0x20d   :  { %v689_v26 = vadd.f32 %v3736_v17, %v654_v25  ;;  %v3060_v27 = vpop.f32.mrb[30].mxu0  ;;  %3081 = vmatprep.mubr.msk.bf16.mxu1 %vm751_vm4, %v719_v22  ;;  %v76_v22 = vld [vmem:[%s4479_s4 + $0x20] sm:$0xff] }
 0x20e   :  { %v692_v28 = vadd.f32 %v3060_v27, %v3736_v17  ;;  %v657_v29 = vpop.f32.mrb[31].mxu0  ;;  %3082 = vmatmul.mubr.msk.bf16.gmra.mrb[24].mxu1 %vm751_vm4, %v720_v21  ;;  %v711_v31 = vmax.f32 %v691_v24, 0.0  ;;  %v77_v24 = vld [vmem:[%s4479_s4 + $0x28] sm:$0xff] }
 0x20f   :  { %v690_v30 = vadd.f32 %v3736_v17, %v657_v29  ;;  %v709_v33 = vmax.f32 %v689_v26, 0.0 }
 0x210   :  { %v712_v32 = vmax.f32 %v692_v28, 0.0 }
 0x211   :  { %v710_v34 = vmax.f32 %v690_v30, 0.0 }
 0x212   :  { %v722_v35 = vpack.c.bf16 %v712_v32, %v711_v31 }
 0x213   :  { %v721_v36 = vpack.c.bf16 %v710_v34, %v709_v33 }
 0x215   :  { %3085 = vmatprep.mubr.msk.bf16.mxu1 %vm751_vm4, %v721_v36 }
 0x216   :  { %3086 = vmatmul.mubr.msk.bf16.gmra.mrb[28].mxu1 %vm751_vm4, %v722_v35 }
 0x2c9   :  { %v3071_v41 = vpop.f32.mrb[12].mxu1 }
 0x2ca   :  { %v825_v42 = vadd.f32 %v3071_v41, %v3787_v40  ;;  %v816_v43 = vpop.f32.mrb[13].mxu1 }
 0x2cb   :  { %v817_v44 = vadd.f32 %v816_v43, %v3787_v40  ;;  %v3072_v45 = vpop.f32.mrb[14].mxu1 }
 0x2cc   :  { %v897_v46 = vmax.f32 %v825_v42, 0.0  ;;  %v828_v47 = vadd.f32 %v3072_v45, %v3787_v40  ;;  %v819_v48 = vpop.f32.mrb[15].mxu1  ;;  %v82_v42 = vld [vmem:[%s4479_s4 + $0x50] sm:$0xff] }
 0x2cd   :  { %v895_v50 = vmax.f32 %v817_v44, 0.0  ;;  %v820_v52 = vadd.f32 %v819_v48, %v3787_v40  ;;  %v83_v44 = vld [vmem:[%s4479_s4 + $0x58] sm:$0xff]  ;;  %v81_v48 = vld [vmem:[%s4479_s4 + $0x48] sm:$0xff] }
 0x2ce   :  { %v898_v54 = vmax.f32 %v828_v47, 0.0  ;;  %v917_v57 = vmul.f32 %v897_v46, %v74_v49  ;;  %v80_v46 = vld [vmem:[%s4479_s4 + $0x40] sm:$0xff] }
 0x2cf   :  { %v896_v56 = vmax.f32 %v820_v52, 0.0  ;;  %v915_v59 = vmul.f32 %v895_v50, %v72_v53 }
 0x2d0   :  { %v918_v58 = vmul.f32 %v898_v54, %v75_v51 }
 0x2d1   :  { %v916_v60 = vmul.f32 %v896_v56, %v73_v55  ;;  %v3075_v61 = vpop.f32.mrb[16].mxu1 }
 0x2d2   :  { %v936_v62 = vpack.c.bf16 %v918_v58, %v917_v57  ;;  %v841_v63 = vadd.f32 %v3075_v61, %v3787_v40  ;;  %v832_v1 = vpop.f32.mrb[17].mxu1 }
 0x2d3   :  { %v935_v3 = vpack.c.bf16 %v916_v60, %v915_v59  ;;  %v833_v4 = vadd.f32 %v832_v1, %v3787_v40  ;;  %v3076_v11 = vpop.f32.mrb[18].mxu1  ;;  %v86_v1 = vld [vmem:[%s4479_s4 + $0x70] sm:$0xff] }
 0x2d4   :  { %v901_v13 = vmax.f32 %v841_v63, 0.0  ;;  %v844_v14 = vadd.f32 %v3076_v11, %v3787_v40  ;;  %v835_v15 = vpop.f32.mrb[19].mxu1 }
 0x2d5   :  { %v899_v19 = vmax.f32 %v833_v4, 0.0  ;;  %v836_v21 = vadd.f32 %v835_v15, %v3787_v40  ;;  %3097 = vmatprep.mubr.msk.bf16.mxu1 %vm751_vm4, %v935_v3  ;;  %v87_v4 = vld [vmem:[%s4479_s4 + $0x78] sm:$0xff]  ;;  %v85_v15 = vld [vmem:[%s4479_s4 + $0x68] sm:$0xff] }
 0x2d6   :  { %v902_v23 = vmax.f32 %v844_v14, 0.0  ;;  %3098 = vmatmul.mubr.msk.bf16.vlgmr.msra.gmra.mrb[32].mxu1 %vm751_vm4, %v936_v62  ;;  %v921_v26 = vmul.f32 %v901_v13, %v78_v18  ;;  %v84_v13 = vld [vmem:[%s4479_s4 + $0x60] sm:$0xff] }
 0x2d7   :  { %v900_v25 = vmax.f32 %v836_v21, 0.0  ;;  %v919_v28 = vmul.f32 %v899_v19, %v76_v22 }
 0x2d8   :  { %v922_v27 = vmul.f32 %v902_v23, %v79_v20 }
 0x2d9   :  { %v920_v29 = vmul.f32 %v900_v25, %v77_v24  ;;  %v3079_v30 = vpop.f32.mrb[20].mxu1 }
 0x2da   :  { %v938_v31 = vpack.c.bf16 %v922_v27, %v921_v26  ;;  %v857_v32 = vadd.f32 %v3079_v30, %v3787_v40  ;;  %v848_v33 = vpop.f32.mrb[21].mxu1 }
 0x2db   :  { %v937_v34 = vpack.c.bf16 %v920_v29, %v919_v28  ;;  %v849_v35 = vadd.f32 %v848_v33, %v3787_v40  ;;  %v3080_v36 = vpop.f32.mrb[22].mxu1  ;;  %v90_v33 = vld [vmem:[%s4479_s4 + $0x90] sm:$0xff] }
 0x2dc   :  { %v905_v38 = vmax.f32 %v857_v32, 0.0  ;;  %v860_v39 = vadd.f32 %v3080_v36, %v3787_v40  ;;  %v851_v41 = vpop.f32.mrb[23].mxu1 }
 0x2dd   :  { %v903_v43 = vmax.f32 %v849_v35, 0.0  ;;  %v852_v45 = vadd.f32 %v851_v41, %v3787_v40  ;;  %3101 = vmatprep.mubr.msk.bf16.mxu1 %vm751_vm4, %v937_v34  ;;  %v91_v35 = vld [vmem:[%s4479_s4 + $0x98] sm:$0xff]  ;;  %v89_v41 = vld [vmem:[%s4479_s4 + $0x88] sm:$0xff] }
 0x2de   :  { %v906_v47 = vmax.f32 %v860_v39, 0.0  ;;  %3102 = vmatmul.mubr.msk.bf16.gmra.mrb[36].mxu1 %vm751_vm4, %v938_v31  ;;  %v925_v50 = vmul.f32 %v905_v38, %v82_v42  ;;  %v88_v38 = vld [vmem:[%s4479_s4 + $0x80] sm:$0xff] }
 0x2df   :  { %v904_v49 = vmax.f32 %v852_v45, 0.0  ;;  %v923_v52 = vmul.f32 %v903_v43, %v80_v46 }
 0x2e0   :  { %v926_v51 = vmul.f32 %v906_v47, %v83_v44 }
 0x2e1   :  { %v924_v53 = vmul.f32 %v904_v49, %v81_v48  ;;  %v3083_v54 = vpop.f32.mrb[24].mxu1  ;;  %v3518_v49 = vmov 0  }
 0x2e2   :  { %v940_v55 = vpack.c.bf16 %v926_v51, %v925_v50  ;;  %v873_v56 = vadd.f32 %v3083_v54, %v3787_v40  ;;  %v864_v57 = vpop.f32.mrb[25].mxu1  ;;  %1156 = vmatprep.subr.bf16.mxu0 %v3518_v49  ;;  %v3885_v50 = vld [vmem:[%s4480_s3 + $0x4] ss:$8 sps:$4 sm:$0xff]  }
 0x2e3   :  { %v939_v58 = vpack.c.bf16 %v924_v53, %v923_v52  ;;  %v865_v59 = vadd.f32 %v864_v57, %v3787_v40  ;;  %v3084_v60 = vpop.f32.mrb[26].mxu1  ;;  %2732 = vmatprep.mubr.msk.bf16.mxu0 %vm1146_vm5, %v3885_v50  ;;  %v3892_v51 = vld [vmem:[%s4478_s6 + $0x4] sm:$0xff]   ;;  %v3898_v52 = vld [vmem:[%s4478_s6 + $0xc] sm:$0xff]  }
 0x2e4   :  { %v909_v61 = vmax.f32 %v873_v56, 0.0  ;;  %v876_v62 = vadd.f32 %v3084_v60, %v3787_v40  ;;  %v867_v63 = vpop.f32.mrb[27].mxu1  ;;  %3118 = vmatpush3.bf16.msra.mxu1 %v3892_v51 }
 0x2e5   :  { %v907_v3 = vmax.f32 %v865_v59, 0.0  ;;  %v868_v11 = vadd.f32 %v867_v63, %v3787_v40  ;;  %3105 = vmatprep.mubr.msk.bf16.mxu1 %vm751_vm4, %v939_v58  ;;  %3119 = vmatprep.subr.bf16.mxu1 %v3516_v0 }
 0x2e6   :  { %v910_v14 = vmax.f32 %v876_v62, 0.0  ;;  %3106 = vmatmul.mubr.msk.bf16.gmra.mrb[40].mxu1 %vm751_vm4, %v940_v55  ;;  %v929_v19 = vmul.f32 %v909_v61, %v86_v1 }
 0x2e7   :  { %v908_v18 = vmax.f32 %v868_v11, 0.0  ;;  %v927_v21 = vmul.f32 %v907_v3, %v84_v13 }
 0x2e8   :  { %v930_v20 = vmul.f32 %v910_v14, %v87_v4  ;;  %3120 = vmatpush3.bf16.msra.mxu1 %v3898_v52 }
 0x2e9   :  { %v928_v22 = vmul.f32 %v908_v18, %v85_v15  ;;  %v3087_v23 = vpop.f32.mrb[28].mxu1  ;;  %3147 = vmatprep.subr.bf16.mxu1 %v3516_v0 }
 0x2ea   :  { %v942_v24 = vpack.c.bf16 %v930_v20, %v929_v19  ;;  %v889_v25 = vadd.f32 %v3087_v23, %v3787_v40  ;;  %v880_v26 = vpop.f32.mrb[29].mxu1 }
 0x2eb   :  { %v941_v27 = vpack.c.bf16 %v928_v22, %v927_v21  ;;  %v881_v28 = vadd.f32 %v880_v26, %v3787_v40  ;;  %v3088_v29 = vpop.f32.mrb[30].mxu1 }
 0x2ec   :  { %v913_v30 = vmax.f32 %v889_v25, 0.0  ;;  %v892_v31 = vadd.f32 %v3088_v29, %v3787_v40  ;;  %v883_v32 = vpop.f32.mrb[31].mxu1 }
 0x2ed   :  { %v911_v34 = vmax.f32 %v881_v28, 0.0  ;;  %v884_v36 = vadd.f32 %v883_v32, %v3787_v40  ;;  %3109 = vmatprep.mubr.msk.bf16.mxu1 %vm751_vm4, %v941_v27  ;;  %v3923_v32 = vld [vmem:[%s4480_s3 + $0x14] ss:$8 sps:$4 sm:$0xff]  }
 0x2ee   :  { %v914_v39 = vmax.f32 %v892_v31, 0.0  ;;  %3110 = vmatmul.mubr.msk.bf16.gmra.mrb[44].mxu1 %vm751_vm4, %v942_v24  ;;  %v933_v43 = vmul.f32 %v913_v30, %v90_v33  ;;  %v106_v30 = vld [vmem:[%s4478_s6] sm:$0xf] }
 0x2ef   :  { %v912_v42 = vmax.f32 %v884_v36, 0.0  ;;  %v931_v45 = vmul.f32 %v911_v34, %v88_v38  ;;  %v3918_v31 = vld [vmem:[%s4480_s3] ss:$8 sps:$4 sm:$0xff]   ;;  %v3927_v33 = vsel %vm151_vm0, %v106_v30, 0 }
 0x2f0   :  { %v934_v44 = vmul.f32 %v914_v39, %v91_v35  ;;  %v71_v34 = vld [vmem:[%s4480_s3 + $0x20] sm:$0xff]  ;;  %v3940_v35 = vld [vmem:[%s4480_s3 + $0x10] ss:$8 sps:$4 sm:$0xff]  }
 0x2f1   :  { %v932_v46 = vmul.f32 %v912_v42, %v89_v41  ;;  %v3942_v36 = vcombine.high %v71_v34, %v71_v34  ;;  %v3947_v38 = vcombine.low %v71_v34, %v71_v34 }
 0x2f2   :  { %v944_v47 = vpack.c.bf16 %v934_v44, %v933_v43 }
 0x2f3   :  { %v943_v48 = vpack.c.bf16 %v932_v46, %v931_v45 }
 0x2f5   :  { %3113 = vmatprep.mubr.msk.bf16.mxu1 %vm751_vm4, %v943_v48 }
 0x2f6   :  { %3114 = vmatmul.mubr.msk.bf16.gmra.mrb[48].mxu1 %vm751_vm4, %v944_v47 }
 0x2f7   :  { %3121 = vmatprep.mubr.msk.bf16.mxu1 %vm3517_vm1, %v3516_v0 }
 0x3a9   :  { %v3099_v53 = vpop.f32.mrb[32].mxu1 }
 0x3aa   :  { %v1033_v54 = vpop.f32.mrb[33].mxu1 }
 0x3ab   :  { %v3100_v55 = vpop.f32.mrb[34].mxu1 }
 0x3ac   :  { %v1113_v56 = vpack.c.bf16 %v3100_v55, %v3099_v53  ;;  %v1036_v57 = vpop.f32.mrb[35].mxu1 }
 0x3ad   :  { %v1112_v58 = vpack.c.bf16 %v1036_v57, %v1033_v54 }
 0x3af   :  { %1157 = vmatpush1.bf16.msra.mxu0 %v1112_v58 }
 0x3b0   :  { %1158 = vmatprep.subr.bf16.mxu0 %v3518_v49 }
 0x3b1   :  { %v3103_v59 = vpop.f32.mrb[36].mxu1 }
 0x3b2   :  { %v1049_v60 = vpop.f32.mrb[37].mxu1 }
 0x3b3   :  { %v3104_v61 = vpop.f32.mrb[38].mxu1  ;;  %1159 = vmatpush1.bf16.msra.mxu0 %v1113_v56 }
 0x3b4   :  { %v1115_v62 = vpack.c.bf16 %v3104_v61, %v3103_v59  ;;  %v1052_v63 = vpop.f32.mrb[39].mxu1  ;;  %1160 = vmatprep.subr.bf16.mxu0 %v3518_v49 }
 0x3b5   :  { %v1114_v1 = vpack.c.bf16 %v1052_v63, %v1049_v60  ;;  %v3983_v63 = vld [vmem:[%s4478_s6 + $0x1c] sm:$0xff]  }
 0x3b7   :  { %1161 = vmatpush1.bf16.msra.mxu0 %v1114_v1 }
 0x3b8   :  { %1162 = vmatprep.subr.bf16.mxu0 %v3518_v49 }
 0x3b9   :  { %v3107_v3 = vpop.f32.mrb[40].mxu1 }
 0x3ba   :  { %v1065_v4 = vpop.f32.mrb[41].mxu1 }
 0x3bb   :  { %v3108_v11 = vpop.f32.mrb[42].mxu1  ;;  %1163 = vmatpush1.bf16.msra.mxu0 %v1115_v62 }
 0x3bc   :  { %v1117_v13 = vpack.c.bf16 %v3108_v11, %v3107_v3  ;;  %v1068_v14 = vpop.f32.mrb[43].mxu1  ;;  %1164 = vmatprep.subr.bf16.mxu0 %v3518_v49 }
 0x3bd   :  { %v1116_v15 = vpack.c.bf16 %v1068_v14, %v1065_v4 }
 0x3bf   :  { %1165 = vmatpush1.bf16.msra.mxu0 %v1116_v15  ;;  %v3990_v15 = vld [vmem:[%s4478_s6 + $0x24] sm:$0xff]  }
 0x3c0   :  { %1166 = vmatprep.subr.bf16.mxu0 %v3518_v49 }
 0x3c1   :  { %v3111_v18 = vpop.f32.mrb[44].mxu1 }
 0x3c2   :  { %v1081_v19 = vpop.f32.mrb[45].mxu1 }
 0x3c3   :  { %v3112_v20 = vpop.f32.mrb[46].mxu1  ;;  %1167 = vmatpush1.bf16.msra.mxu0 %v1117_v13 }
 0x3c4   :  { %v1119_v21 = vpack.c.bf16 %v3112_v20, %v3111_v18  ;;  %v1084_v22 = vpop.f32.mrb[47].mxu1  ;;  %1168 = vmatprep.subr.bf16.mxu0 %v3518_v49  ;;  %v127_v18 = vld [vmem:[%s4478_s6 + $0x54] sm:$0x1] }
 0x3c5   :  { %v1118_v23 = vpack.c.bf16 %v1084_v22, %v1081_v19  ;;  %v128_v19 = vunpack.c.l.bf16 %v127_v18 }
 0x3c7   :  { %1169 = vmatpush1.bf16.msra.mxu0 %v1118_v23  ;;  %v3998_v20 = vrot.slane %v128_v19, %v3733_v16 }
 0x3c8   :  { %1170 = vmatprep.subr.bf16.mxu0 %v3518_v49 }
 0x3c9   :  { %v3115_v24 = vpop.f32.mrb[48].mxu1 }
 0x3ca   :  { %v1097_v25 = vpop.f32.mrb[49].mxu1 }
 0x3cb   :  { %v3116_v26 = vpop.f32.mrb[50].mxu1  ;;  %1171 = vmatpush1.bf16.msra.mxu0 %v1119_v21 }
 0x3cc   :  { %v1121_v27 = vpack.c.bf16 %v3116_v26, %v3115_v24  ;;  %v1100_v28 = vpop.f32.mrb[51].mxu1  ;;  %1172 = vmatprep.subr.bf16.mxu0 %v3518_v49 }
 0x3cd   :  { %v1120_v29 = vpack.c.bf16 %v1100_v28, %v1097_v25 }
 0x3cf   :  { %1173 = vmatpush1.bf16.msra.mxu0 %v1120_v29 }
 0x3d0   :  { %1174 = vmatprep.subr.bf16.mxu0 %v3518_v49 }
 0x3d3   :  { %1175 = vmatpush1.bf16.msra.mxu0 %v1121_v27 }
 0x3d4   :  { %3133 = vmatprep.subr.bf16.mxu0 %v3516_v0 }
 0x3d6   :  { %1189 = vmatmul.mubr.bf16.vlgmr.msra.gmra.mrb[32].mxu0 %v3918_v31 }
 0x3d7   :  { %2733 = vmatprep.mubr.msk.bf16.mxu0 %vm1146_vm5, %v3923_v32  ;;  %3134 = vmatpush3.bf16.msra.mxu0 %v3927_v33 }
 0x3d8   :  { %3163 = vmatprep.subr.bf16.mxu0 %v3516_v0 }
 0x3de   :  { %1197 = vmatmul.mubr.bf16.gmra.mrb[36].mxu0 %v3940_v35 }
 0x3df   :  { %2734 = vmatprep.mubr.msk.bf16.mxu0 %vm1146_vm5, %v3942_v36 }
 0x3e6   :  { %1205 = vmatmul.mubr.bf16.gmra.mrb[40].mxu0 %v3947_v38 }
 0x3e7   :  { %3135 = vmatprep.mubr.msk.bf16.mxu0 %vm3517_vm1, %v3516_v0 }
 0x3ee   :  { %3136 = vmatmul.mubr.msk.bf16.vlgmr.msra.gmra.mrb[44].mxu0 %vm141_vm2, %v3578_v5  ;;  %v3967_v5 = vld [vmem:[%s4478_s6 + $0x14] sm:$0xff]  }
 0x3ef   :  { %3139 = vmatprep.mubr.msk.bf16.mxu0 %vm3517_vm1, %v3516_v0  ;;  %3164 = vmatpush3.bf16.msra.mxu0 %v3990_v15 }
 0x3f0   :  { %3165 = vmatprep.subr.bf16.mxu0 %v3516_v0 }
 0x3f6   :  { %3140 = vmatmul.mubr.msk.bf16.gmra.mrb[48].mxu0 %vm141_vm2, %v3601_v10 }
 0x3f7   :  { %3143 = vmatprep.mubr.msk.bf16.mxu0 %vm3517_vm1, %v3516_v0 }
 0x3fe   :  { %3144 = vmatmul.mubr.msk.bf16.gmra.mrb[52].mxu0 %vm141_vm2, %v3614_v12 }
 0x3ff   :  { %3167 = vmatprep.mubr.msk.bf16.mxu0 %vm3517_vm1, %v3516_v0 }
 0x4a9   :  { %v1190_v39 = vpop.f32.mrb[32].mxu0 }
 0x4aa   :  { %v1192_v41 = vpop.f32.mrb[33].mxu0 }
 0x4ab   :  { %v1193_v42 = vpop.f32.mrb[34].mxu0 }
 0x4ac   :  { %v1212_v43 = vpack.c.bf16 %v1193_v42, %v1190_v39  ;;  %v1195_v44 = vpop.f32.mrb[35].mxu0 }
 0x4ae   :  { %3122 = vmatmul.mubr.msk.bf16.vlgmr.msra.gmra.mrb[52].mxu1 %vm1146_vm5, %v1212_v43 }
 0x4af   :  { %3125 = vmatprep.mubr.msk.bf16.mxu1 %vm3517_vm1, %v3516_v0  ;;  %3148 = vmatpush3.bf16.msra.mxu1 %v3967_v5 }
 0x4b0   :  { %3149 = vmatprep.subr.bf16.mxu1 %v3516_v0 }
 0x4b1   :  { %v1198_v10 = vpop.f32.mrb[36].mxu0 }
 0x4b2   :  { %v1200_v12 = vpop.f32.mrb[37].mxu0 }
 0x4b3   :  { %v1201_v45 = vpop.f32.mrb[38].mxu0  ;;  %3150 = vmatpush3.bf16.msra.mxu1 %v3983_v63 }
 0x4b4   :  { %v1213_v46 = vpack.c.bf16 %v1201_v45, %v1198_v10  ;;  %v1203_v47 = vpop.f32.mrb[39].mxu0  ;;  %3179 = vmatprep.subr.bf16.mxu1 %v3516_v0 }
 0x4b6   :  { %3126 = vmatmul.mubr.msk.bf16.gmra.mrb[56].mxu1 %vm1146_vm5, %v1213_v46 }
 0x4b7   :  { %3129 = vmatprep.mubr.msk.bf16.mxu1 %vm3517_vm1, %v3516_v0 }
 0x4b9   :  { %v1206_v48 = vpop.f32.mrb[40].mxu0 }
 0x4ba   :  { %v1214_v53 = vpack.c.bf16 %v1206_v48, %v1206_v48  ;;  %v1208_v54 = vpop.f32.mrb[41].mxu0 }
 0x4bb   :  { %v1209_v55 = vpop.f32.mrb[42].mxu0 }
 0x4bc   :  { %v1210_v56 = vpop.f32.mrb[43].mxu0 }
 0x4be   :  { %3130 = vmatmul.mubr.msk.bf16.gmra.mrb[60].mxu1 %vm1146_vm5, %v1214_v53 }
 0x4bf   :  { %3151 = vmatprep.mubr.msk.bf16.mxu1 %vm3517_vm1, %v3516_v0 }
 0x4c1   :  { %v1329_v57 = vpop.f32.mrb[44].mxu0 }
 0x4c2   :  { %v3137_v58 = vpop.f32.mrb[45].mxu0 }
 0x4c3   :  { %v1332_v59 = vpop.f32.mrb[46].mxu0 }
 0x4c4   :  { %v3138_v60 = vpop.f32.mrb[47].mxu0 }
 0x4c9   :  { %v1337_v61 = vpop.f32.mrb[48].mxu0 }
 0x4ca   :  { %v3141_v62 = vpop.f32.mrb[49].mxu0 }
 0x4cb   :  { %v1340_v1 = vpop.f32.mrb[50].mxu0 }
 0x4cc   :  { %v3142_v3 = vpop.f32.mrb[51].mxu0 }
 0x4d1   :  { %v1345_v4 = vpop.f32.mrb[52].mxu0 }
 0x4d2   :  { %v3145_v11 = vpop.f32.mrb[53].mxu0 }
 0x4d3   :  { %v1348_v13 = vpop.f32.mrb[54].mxu0 }
 0x4d4   :  { %v3146_v14 = vpop.f32.mrb[55].mxu0 }
 0x581   :  { %v1270_v21 = vpop.f32.mrb[52].mxu1 }
 0x582   :  { %v1330_v22 = vadd.f32 %v1329_v57, %v1270_v21  ;;  %v3123_v23 = vpop.f32.mrb[53].mxu1 }
 0x583   :  { %v1273_v24 = vpop.f32.mrb[54].mxu1 }
 0x584   :  { %v1355_v25 = vadd.f32 %v3998_v20, %v1330_v22  ;;  %v1333_v26 = vadd.f32 %v1332_v59, %v1273_v24  ;;  %v3124_v27 = vpop.f32.mrb[55].mxu1 }
 0x586   :  { %v1356_v28 = vadd.f32 %v3998_v20, %v1333_v26  ;;  %v1360_v29 = vmax.f32 %v1355_v25, 0.0 }
 0x588   :  { %v1361_v30 = vmax.f32 %v1356_v28, 0.0 }
 0x589   :  { %v1278_v34 = vpop.f32.mrb[56].mxu1 }
 0x58a   :  { %v1365_v39 = vpack.c.bf16 %v1361_v30, %v1360_v29  ;;  %v1338_v41 = vadd.f32 %v1337_v61, %v1278_v34  ;;  %v3127_v42 = vpop.f32.mrb[57].mxu1  ;;  %v129_v61 = vld [vmem:[%s4478_s6 + $0x58] sm:$0x1]  ;;  %v3466_v29 = vld [vmem:[%s4474_s5 + $0x8] sm:$0xff]  }
 0x58b   :  { %v1281_v43 = vpop.f32.mrb[58].mxu1  ;;  %v130_v62 = vunpack.c.l.bf16 %v129_v61 }
 0x58c   :  { %v1357_v44 = vadd.f32 %v3998_v20, %v1338_v41  ;;  %v1341_v10 = vadd.f32 %v1340_v1, %v1281_v43  ;;  %v3128_v12 = vpop.f32.mrb[59].mxu1  ;;  %3152 = vmatmul.mubr.msk.bf16.vlgmr.msra.gmra.mrb[64].mxu1 %vm1146_vm5, %v1365_v39 }
 0x58d   :  { %3155 = vmatprep.mubr.msk.bf16.mxu1 %vm3517_vm1, %v3516_v0  ;;  %3180 = vmatpush3.bf16.msra.mxu1 %v3584_v7  ;;  %v4018_v7 = vld [vmem:[%s4478_s6 + $0x2c] sm:$0xff]   ;;  %v4026_v1 = vrot.slane %v130_v62, %v3733_v16 }
 0x58e   :  { %v1358_v45 = vadd.f32 %v3998_v20, %v1341_v10  ;;  %v1362_v46 = vmax.f32 %v1357_v44, 0.0  ;;  %3166 = vmatpush3.bf16.msra.mxu0 %v4018_v7 }
 0x58f   :  { %3193 = vmatprep.subr.bf16.mxu0 %v3516_v0 }
 0x590   :  { %v1363_v47 = vmax.f32 %v1358_v45, 0.0  ;;  %v131_v45 = vld [vmem:[%s4478_s6 + $0x5c] sm:$0x1] }
 0x591   :  { %v1286_v48 = vpop.f32.mrb[60].mxu1 }
 0x592   :  { %v1366_v53 = vpack.c.bf16 %v1363_v47, %v1362_v46  ;;  %v1346_v54 = vadd.f32 %v1345_v4, %v1286_v48  ;;  %v3131_v55 = vpop.f32.mrb[61].mxu1  ;;  %v132_v46 = vunpack.c.l.bf16 %v131_v45 }
 0x593   :  { %v1289_v56 = vpop.f32.mrb[62].mxu1 }
 0x594   :  { %3156 = vmatmul.mubr.msk.bf16.gmra.mrb[68].mxu1 %vm1146_vm5, %v1366_v53  ;;  %v1359_v57 = vadd.f32 %v3998_v20, %v1346_v54  ;;  %v3132_v58 = vpop.f32.mrb[63].mxu1  ;;  %v4050_v47 = vrot.slane %v132_v46, %v3733_v16  ;;  %v3467_v56 = vld [vmem:[%s4475_s0] sm:$0xff]  ;;  %v3468_v16 = vld [vmem:[%s4475_s0 + $0x8] sm:$0xff] }
 0x595   :  { %3159 = vmatprep.mubr.msk.bf16.mxu1 %vm3517_vm1, %v3516_v0 }
 0x596   :  { %v1364_v59 = vmax.f32 %v1359_v57, 0.0 }
 0x598   :  { %v1367_v60 = vpack.c.bf16 %v1364_v59, %v1364_v59 }
 0x59c   :  { %3160 = vmatmul.mubr.msk.bf16.gmra.mrb[72].mxu1 %vm1146_vm5, %v1367_v60 }
 0x59d   :  { %3181 = vmatprep.mubr.msk.bf16.mxu1 %vm3517_vm1, %v3516_v0 }
 0x65f   :  { %v1427_v3 = vpop.f32.mrb[64].mxu1 }
 0x660   :  { %v1428_v4 = vadd.f32 %v1427_v3, %v4026_v1  ;;  %v3153_v11 = vpop.f32.mrb[65].mxu1 }
 0x661   :  { %v1430_v13 = vpop.f32.mrb[66].mxu1 }
 0x662   :  { %v1431_v14 = vadd.f32 %v1430_v13, %v4026_v1  ;;  %v3154_v18 = vpop.f32.mrb[67].mxu1  ;;  %v1449_v19 = vmax.f32 %v1428_v4, 0.0  ;;  %v3469_v13 = vld [vmem:[%s4475_s0 + $0x10] sm:$0xff] }
 0x664   :  { %v1450_v21 = vmax.f32 %v1431_v14, 0.0 }
 0x666   :  { %v1454_v22 = vpack.c.bf16 %v1450_v21, %v1449_v19  ;;  %v3470_v21 = vld [vmem:[%s4474_s5 + $0x10] sm:$0xff]  }
 0x667   :  { %v1435_v23 = vpop.f32.mrb[68].mxu1 }
 0x668   :  { %v1436_v24 = vadd.f32 %v1435_v23, %v4026_v1  ;;  %v3157_v25 = vpop.f32.mrb[69].mxu1  ;;  %3168 = vmatmul.mubr.msk.bf16.vlgmr.msra.gmra.mrb[56].mxu0 %vm1146_vm5, %v1454_v22  ;;  %v3471_v22 = vld [vmem:[%s4475_s0 + $0x18] sm:$0xff] }
 0x669   :  { %v1438_v26 = vpop.f32.mrb[70].mxu1  ;;  %3171 = vmatprep.mubr.msk.bf16.mxu0 %vm3517_vm1, %v3516_v0  ;;  %3194 = vmatpush3.bf16.msra.mxu0 %v3566_v2 }
 0x66a   :  { %v1439_v27 = vadd.f32 %v1438_v26, %v4026_v1  ;;  %v3158_v28 = vpop.f32.mrb[71].mxu1  ;;  %3259 = vmatprep.subr.bf16.mxu0 %v3466_v29  ;;  %v1451_v30 = vmax.f32 %v1436_v24, 0.0 }
 0x66c   :  { %v1452_v34 = vmax.f32 %v1439_v27, 0.0 }
 0x66e   :  { %v1455_v39 = vpack.c.bf16 %v1452_v34, %v1451_v30 }
 0x66f   :  { %v1443_v41 = vpop.f32.mrb[72].mxu1 }
 0x670   :  { %3172 = vmatmul.mubr.msk.bf16.gmra.mrb[60].mxu0 %vm1146_vm5, %v1455_v39  ;;  %v1444_v42 = vadd.f32 %v1443_v41, %v4026_v1  ;;  %v3161_v43 = vpop.f32.mrb[73].mxu1 }
 0x671   :  { %v1446_v44 = vpop.f32.mrb[74].mxu1  ;;  %3175 = vmatprep.mubr.msk.bf16.mxu0 %vm3517_vm1, %v3516_v0 }
 0x672   :  { %v1453_v2 = vmax.f32 %v1444_v42, 0.0  ;;  %v3162_v10 = vpop.f32.mrb[75].mxu1 }
 0x674   :  { %v1456_v12 = vpack.c.bf16 %v1453_v2, %v1453_v2 }
 0x678   :  { %3176 = vmatmul.mubr.msk.bf16.gmra.mrb[64].mxu0 %vm1146_vm5, %v1456_v12 }
 0x679   :  { %3195 = vmatprep.mubr.msk.bf16.mxu0 %vm3517_vm1, %v3516_v0 }
 0x73b   :  { %v1516_v48 = vpop.f32.mrb[56].mxu0 }
 0x73c   :  { %v1517_v53 = vadd.f32 %v1516_v48, %v4050_v47  ;;  %v3169_v54 = vpop.f32.mrb[57].mxu0 }
 0x73d   :  { %v1519_v55 = vpop.f32.mrb[58].mxu0 }
 0x73e   :  { %v4056_v57 = vadd.f32 %v3467_v56, %v1517_v53  ;;  %v1520_v58 = vadd.f32 %v1519_v55, %v4050_v47  ;;  %v3170_v59 = vpop.f32.mrb[59].mxu0 }
 0x740   :  { %1543 = vst.msk [vmem:[%s4481_s7] sm:$0xff] %vm141_vm2, %v4056_v57  ;;  %v4067_v60 = vadd.f32 %v3468_v16, %v1520_v58 }
 0x742   :  { %1544 = vst.msk [vmem:[%s4481_s7 + $0x8] sm:$0xff] %vm141_vm2, %v4067_v60  ;;  %v4076_v61 = vpack.c.bf16 %v4067_v60, %v4056_v57 }
 0x743   :  { %v1524_v62 = vpop.f32.mrb[60].mxu0 }
 0x744   :  { %v1525_v3 = vadd.f32 %v1524_v62, %v4050_v47  ;;  %v3173_v4 = vpop.f32.mrb[61].mxu0  ;;  %3182 = vmatmul.mubr.msk.bf16.vlgmr.msra.gmra.mrb[76].mxu1 %vm141_vm2, %v4076_v61  ;;  %3196 = vmatmul.mubr.msk.bf16.vlgmr.msra.gmra.mrb[68].mxu0 %vm141_vm2, %v4076_v61 }
 0x745   :  { %v1527_v11 = vpop.f32.mrb[62].mxu0  ;;  %3185 = vmatprep.mubr.msk.bf16.mxu1 %vm3517_vm1, %v3516_v0  ;;  %3199 = vmatprep.mubr.msk.bf16.mxu0 %vm3517_vm1, %v3516_v0 }
 0x746   :  { %v4090_v14 = vadd.f32 %v3469_v13, %v1525_v3  ;;  %v1528_v18 = vadd.f32 %v1527_v11, %v4050_v47  ;;  %v3174_v19 = vpop.f32.mrb[63].mxu0  ;;  %3260 = vmatpush3.bf16.msra.mxu0 %v3466_v29  ;;  %v3472_v29 = vld [vmem:[%s4475_s0 + $0x20] sm:$0xff] }
 0x747   :  { %3261 = vmatprep.subr.bf16.mxu0 %v3470_v21 }
 0x748   :  { %1545 = vst.msk [vmem:[%s4481_s7 + $0x10] sm:$0xff] %vm141_vm2, %v4090_v14  ;;  %v4104_v23 = vadd.f32 %v3471_v22, %v1528_v18 }
 0x74a   :  { %1546 = vst.msk [vmem:[%s4481_s7 + $0x18] sm:$0xff] %vm141_vm2, %v4104_v23  ;;  %v4113_v24 = vpack.c.bf16 %v4104_v23, %v4090_v14  ;;  %3262 = vmatpush3.bf16.msra.mxu0 %v3470_v21 }
 0x74b   :  { %v1532_v25 = vpop.f32.mrb[64].mxu0  ;;  %3263 = vmatprep.subr.bf16.mxu0 %v3713_v6 }
 0x74c   :  { %v1533_v26 = vadd.f32 %v1532_v25, %v4050_v47  ;;  %3186 = vmatmul.mubr.msk.bf16.gmra.mrb[80].mxu1 %vm141_vm2, %v4113_v24  ;;  %3200 = vmatmul.mubr.msk.bf16.gmra.mrb[72].mxu0 %vm141_vm2, %v4113_v24  ;;  %v3177_v27 = vpop.f32.mrb[65].mxu0 }
 0x74d   :  { %v1535_v28 = vpop.f32.mrb[66].mxu0  ;;  %3189 = vmatprep.mubr.msk.bf16.mxu1 %vm3517_vm1, %v3516_v0  ;;  %3203 = vmatprep.mubr.msk.bf16.mxu0 %vm3517_vm1, %v3516_v0  ;;  %v3474_v27 = vld [vmem:[%s4476_s2 + $0x8] sm:$0xff]  }
 0x74e   :  { %v4128_v30 = vadd.f32 %v3472_v29, %v1533_v26  ;;  %v3178_v34 = vpop.f32.mrb[67].mxu0  ;;  %3264 = vmatpush3.bf16.msra.mxu0 %v3713_v6  ;;  %v3473_v6 = vld [vmem:[%s4476_s2] sm:$0xff]   ;;  %v3475_v28 = vld [vmem:[%s4476_s2 + $0x10] sm:$0xff]  }
 0x74f   :  { %3265 = vmatprep.subr.bf16.mxu0 %v3720_v8 }
 0x750   :  { %1547 = vst.msk [vmem:[%s4481_s7 + $0x20] sm:$0xff] %vm141_vm2, %v4128_v30  ;;  %v4139_v39 = vpack.c.bf16 %v4128_v30, %v4128_v30 }
 0x752   :  { %3266 = vmatpush3.bf16.msra.mxu0 %v3720_v8 }
 0x753   :  { %3287 = vmatprep.subr.bf16.mxu0 %v3727_v9 }
 0x754   :  { %3190 = vmatmul.mubr.msk.bf16.gmra.mrb[84].mxu1 %vm141_vm2, %v4139_v39  ;;  %3204 = vmatmul.mubr.msk.bf16.gmra.mrb[76].mxu0 %vm141_vm2, %v4139_v39 }
 0x755   :  { %3213 = vmatprep.mubr.msk.bf16.mxu1 %vm326_vm3, %v3473_v6  ;;  %v3476_v6 = vld [vmem:[%s4476_s2 + $0x18] sm:$0xff]  }
 0x817   :  { %v1594_v41 = vpop.f32.mrb[76].mxu1  ;;  %v1650_v42 = vpop.f32.mrb[68].mxu0 }
 0x818   :  { %v3183_v43 = vpop.f32.mrb[77].mxu1  ;;  %v3197_v44 = vpop.f32.mrb[69].mxu0 }
 0x819   :  { %v1597_v2 = vpop.f32.mrb[78].mxu1  ;;  %v1653_v8 = vpop.f32.mrb[70].mxu0  ;;  %v3479_v43 = vld [vmem:[%s4476_s2 + $0x30] sm:$0xff]   ;;  %v3480_v44 = vld [vmem:[%s4476_s2 + $0x38] sm:$0xff]  }
 0x81a   :  { %v1672_v10 = vpack.c.bf16 %v1597_v2, %v1594_v41  ;;  %v1675_v9 = vpack.c.bf16 %v1653_v8, %v1650_v42  ;;  %v3184_v12 = vpop.f32.mrb[79].mxu1  ;;  %v3198_v45 = vpop.f32.mrb[71].mxu0  ;;  %v3477_v41 = vld [vmem:[%s4476_s2 + $0x20] sm:$0xff]   ;;  %v3478_v42 = vld [vmem:[%s4476_s2 + $0x28] sm:$0xff]  }
 0x81b   :  { %v3481_v2 = vld [vmem:[%s4476_s2 + $0x40] sm:$0xff]   ;;  %v3482_v8 = vld [vmem:[%s4476_s2 + $0x48] sm:$0xff]   ;;  %v3485_v12 = vld [vmem:[%s4477_s1 + $0x10] sm:$0xff]  }
 0x81c   :  { %3207 = vmatprep.subr.bf16.mxu1 %v1675_v9  ;;  %v3486_v45 = vld [vmem:[%s4477_s1 + $0x18] sm:$0xff]  }
 0x81d   :  { %3208 = vmatpush3.bf16.msra.mxu1 %v1675_v9  ;;  %v3484_v9 = vld [vmem:[%s4477_s1 + $0x8] sm:$0xff]  }
 0x81f   :  { %v1602_v46 = vpop.f32.mrb[80].mxu1  ;;  %v1658_v48 = vpop.f32.mrb[72].mxu0 }
 0x820   :  { %v3187_v53 = vpop.f32.mrb[81].mxu1  ;;  %v3201_v54 = vpop.f32.mrb[73].mxu0 }
 0x821   :  { %v1605_v55 = vpop.f32.mrb[82].mxu1  ;;  %v1661_v56 = vpop.f32.mrb[74].mxu0  ;;  %v3489_v53 = vld [vmem:[%s4477_s1 + $0x30] sm:$0xff]   ;;  %v3490_v54 = vld [vmem:[%s4477_s1 + $0x38] sm:$0xff]  }
 0x822   :  { %v1673_v58 = vpack.c.bf16 %v1605_v55, %v1602_v46  ;;  %v1676_v59 = vpack.c.bf16 %v1661_v56, %v1658_v48  ;;  %v3188_v16 = vpop.f32.mrb[83].mxu1  ;;  %v3202_v62 = vpop.f32.mrb[75].mxu0  ;;  %v3487_v46 = vld [vmem:[%s4477_s1 + $0x20] sm:$0xff]   ;;  %v3488_v48 = vld [vmem:[%s4477_s1 + $0x28] sm:$0xff]  }
 0x823   :  { %v3491_v55 = vld [vmem:[%s4477_s1 + $0x40] sm:$0xff]   ;;  %v3492_v56 = vld [vmem:[%s4477_s1 + $0x48] sm:$0xff]  }
 0x824   :  { %3209 = vmatprep.subr.bf16.mxu1 %v1676_v59 }
 0x825   :  { %3210 = vmatpush3.bf16.msra.mxu1 %v1676_v59 }
 0x827   :  { %v1610_v3 = vpop.f32.mrb[84].mxu1  ;;  %v1666_v4 = vpop.f32.mrb[76].mxu0 }
 0x828   :  { %v1677_v11 = vpack.c.bf16 %v1666_v4, %v1666_v4  ;;  %v3191_v13 = vpop.f32.mrb[85].mxu1  ;;  %v3205_v18 = vpop.f32.mrb[77].mxu0  ;;  %v1674_v29 = vpack.c.bf16 %v1610_v3, %v1610_v3 }
 0x829   :  { %v1613_v19 = vpop.f32.mrb[86].mxu1  ;;  %v1669_v21 = vpop.f32.mrb[78].mxu0 }
 0x82a   :  { %v1679_v22 = vsel %vm151_vm0, %v1677_v11, 0  ;;  %v3192_v25 = vpop.f32.mrb[87].mxu1  ;;  %v3206_v26 = vpop.f32.mrb[79].mxu0  ;;  %3419 = vmatprep.subr.msk.bf16.mxu1 %vm151_vm0, %v1677_v11  ;;  %v1795_v34 = vsel %vm151_vm0, %v1674_v29, 0 }
 0x82b   :  { %3212 = vmatpush3.bf16.msra.mxu1 %v1679_v22 }
 0x82c   :  { %3233 = vmatprep.subr.bf16.mxu1 %v1672_v10 }
 0x82e   :  { %3214 = vmatmul.mubr.msk.bf16.vlgmr.msra.gmra.mrb[88].mxu1 %vm326_vm3, %v3474_v27 }
 0x82f   :  { %3234 = vmatpush3.bf16.msra.mxu1 %v1672_v10  ;;  %3217 = vmatprep.mubr.msk.bf16.mxu1 %vm326_vm3, %v3475_v28  ;;  %v3483_v10 = vld [vmem:[%s4477_s1] sm:$0xff]  }
 0x830   :  { %3235 = vmatprep.subr.bf16.mxu1 %v1673_v58 }
 0x833   :  { %3236 = vmatpush3.bf16.msra.mxu1 %v1673_v58 }
 0x834   :  { %3420 = vmatprep.subr.msk.bf16.mxu1 %vm151_vm0, %v1674_v29 }
 0x836   :  { %3218 = vmatmul.mubr.msk.bf16.gmra.mrb[92].mxu1 %vm326_vm3, %v3476_v6 }
 0x837   :  { %3238 = vmatpush3.bf16.msra.mxu1 %v1795_v34  ;;  %3221 = vmatprep.mubr.msk.bf16.mxu1 %vm326_vm3, %v3477_v41 }
 0x838   :  { %2306 = vmatprep.subr.bf16.mxu1 %v3518_v49 }
 0x83e   :  { %3222 = vmatmul.mubr.msk.bf16.gmra.mrb[96].mxu1 %vm326_vm3, %v3478_v42 }
 0x83f   :  { %3225 = vmatprep.mubr.msk.bf16.mxu1 %vm326_vm3, %v3479_v43  ;;  %v3493_v43 = vld [vmem:[%s4478_s6 + $0x34] sm:$0xff]  }
 0x846   :  { %3226 = vmatmul.mubr.msk.bf16.gmra.mrb[100].mxu1 %vm326_vm3, %v3480_v44 }
 0x847   :  { %3229 = vmatprep.mubr.msk.bf16.mxu1 %vm326_vm3, %v3481_v2 }
 0x84e   :  { %3230 = vmatmul.mubr.msk.bf16.gmra.mrb[104].mxu1 %vm326_vm3, %v3482_v8  ;;  %v3494_v8 = vld [vmem:[%s4478_s6 + $0x3c] sm:$0xff]  }
 0x84f   :  { %3239 = vmatprep.mubr.msk.bf16.mxu1 %vm326_vm3, %v3483_v10 }
 0x856   :  { %3240 = vmatmul.mubr.msk.bf16.vlgmr.msra.gmra.mrb[88].mxu1 %vm326_vm3, %v3484_v9 }
 0x857   :  { %3243 = vmatprep.mubr.msk.bf16.mxu1 %vm326_vm3, %v3485_v12 }
 0x85e   :  { %3244 = vmatmul.mubr.msk.bf16.gmra.mrb[92].mxu1 %vm326_vm3, %v3486_v45 }
 0x85f   :  { %3247 = vmatprep.mubr.msk.bf16.mxu1 %vm326_vm3, %v3487_v46 }
 0x866   :  { %3248 = vmatmul.mubr.msk.bf16.gmra.mrb[96].mxu1 %vm326_vm3, %v3488_v48 }
 0x867   :  { %3251 = vmatprep.mubr.msk.bf16.mxu1 %vm326_vm3, %v3489_v53 }
 0x86e   :  { %3252 = vmatmul.mubr.msk.bf16.gmra.mrb[100].mxu1 %vm326_vm3, %v3490_v54  ;;  %v3495_v54 = vld [vmem:[%s4478_s6 + $0x44] sm:$0xff]  }
 0x86f   :  { %3255 = vmatprep.mubr.msk.bf16.mxu1 %vm326_vm3, %v3491_v55 }
 0x876   :  { %3256 = vmatmul.mubr.msk.bf16.gmra.mrb[104].mxu1 %vm326_vm3, %v3492_v56 }
 0x877   :  { %2799 = vmatprep.mubr.msk.bf16.mxu1 %vm1146_vm5, %v3885_v50 }
 0x929   :  { %v3241_v58 = vpop.f32.mrb[88].mxu1 }
 0x92a   :  { %v1912_v59 = vadd.f32 %v3241_v58, %v3736_v17  ;;  %v1831_v16 = vpop.f32.mrb[89].mxu1 }
 0x92b   :  { %v1910_v62 = vadd.f32 %v1831_v16, %v3736_v17  ;;  %v3242_v3 = vpop.f32.mrb[90].mxu1 }
 0x92c   :  { %v1913_v4 = vadd.f32 %v3242_v3, %v3736_v17  ;;  %v1834_v11 = vpop.f32.mrb[91].mxu1  ;;  %v1932_v18 = vmax.f32 %v1912_v59, 0.0 }
 0x92d   :  { %v1911_v13 = vadd.f32 %v1834_v11, %v3736_v17  ;;  %v1930_v21 = vmax.f32 %v1910_v62, 0.0 }
 0x92e   :  { %v1933_v19 = vmax.f32 %v1913_v4, 0.0 }
 0x92f   :  { %v1931_v22 = vmax.f32 %v1911_v13, 0.0 }
 0x930   :  { %v1951_v25 = vpack.c.bf16 %v1933_v19, %v1932_v18 }
 0x931   :  { %v1950_v26 = vpack.c.bf16 %v1931_v22, %v1930_v21  ;;  %v3245_v27 = vpop.f32.mrb[92].mxu1 }
 0x932   :  { %v1916_v50 = vadd.f32 %v3245_v27, %v3736_v17  ;;  %v1847_v28 = vpop.f32.mrb[93].mxu1 }
 0x933   :  { %v1914_v29 = vadd.f32 %v1847_v28, %v3736_v17  ;;  %v3246_v34 = vpop.f32.mrb[94].mxu1  ;;  %3267 = vmatprep.mubr.msk.bf16.mxu0 %vm751_vm4, %v1950_v26 }
 0x934   :  { %v1917_v6 = vadd.f32 %v3246_v34, %v3736_v17  ;;  %v1850_v41 = vpop.f32.mrb[95].mxu1  ;;  %3268 = vmatmul.mubr.msk.bf16.vlgmr.msra.gmra.mrb[80].mxu0 %vm751_vm4, %v1951_v25  ;;  %v1936_v44 = vmax.f32 %v1916_v50, 0.0 }
 0x935   :  { %v1915_v42 = vadd.f32 %v1850_v41, %v3736_v17  ;;  %3288 = vmatpush3.bf16.msra.mxu0 %v3493_v43  ;;  %v1934_v10 = vmax.f32 %v1914_v29, 0.0 }
 0x936   :  { %v1937_v2 = vmax.f32 %v1917_v6, 0.0  ;;  %3289 = vmatprep.subr.bf16.mxu0 %v3494_v8 }
 0x937   :  { %v1935_v9 = vmax.f32 %v1915_v42, 0.0 }
 0x938   :  { %v1953_v12 = vpack.c.bf16 %v1937_v2, %v1936_v44 }
 0x939   :  { %v1952_v45 = vpack.c.bf16 %v1935_v9, %v1934_v10  ;;  %v3249_v46 = vpop.f32.mrb[96].mxu1  ;;  %3290 = vmatpush3.bf16.msra.mxu0 %v3494_v8 }
 0x93a   :  { %v1920_v48 = vadd.f32 %v3249_v46, %v3736_v17  ;;  %v1863_v53 = vpop.f32.mrb[97].mxu1  ;;  %3291 = vmatprep.subr.bf16.mxu0 %v3495_v54 }
 0x93b   :  { %v1918_v55 = vadd.f32 %v1863_v53, %v3736_v17  ;;  %v3250_v56 = vpop.f32.mrb[98].mxu1  ;;  %3271 = vmatprep.mubr.msk.bf16.mxu0 %vm751_vm4, %v1952_v45 }
 0x93c   :  { %v1921_v58 = vadd.f32 %v3250_v56, %v3736_v17  ;;  %v1866_v59 = vpop.f32.mrb[99].mxu1  ;;  %3272 = vmatmul.mubr.msk.bf16.gmra.mrb[84].mxu0 %vm751_vm4, %v1953_v12  ;;  %v1940_v62 = vmax.f32 %v1920_v48, 0.0 }
 0x93d   :  { %v1919_v16 = vadd.f32 %v1866_v59, %v3736_v17  ;;  %3292 = vmatpush3.bf16.msra.mxu0 %v3495_v54  ;;  %v1938_v4 = vmax.f32 %v1918_v55, 0.0 }
 0x93e   :  { %v1941_v3 = vmax.f32 %v1921_v58, 0.0  ;;  %3293 = vmatprep.subr.bf16.mxu0 %v3778_v37 }
 0x93f   :  { %v1939_v11 = vmax.f32 %v1919_v16, 0.0 }
 0x940   :  { %v1955_v13 = vpack.c.bf16 %v1941_v3, %v1940_v62 }
 0x941   :  { %v1954_v18 = vpack.c.bf16 %v1939_v11, %v1938_v4  ;;  %v3253_v19 = vpop.f32.mrb[100].mxu1  ;;  %3294 = vmatpush3.bf16.msra.mxu0 %v3778_v37 }
 0x942   :  { %v1924_v21 = vadd.f32 %v3253_v19, %v3736_v17  ;;  %v1879_v22 = vpop.f32.mrb[101].mxu1  ;;  %3315 = vmatprep.subr.bf16.mxu0 %v3516_v0 }
 0x943   :  { %v1922_v25 = vadd.f32 %v1879_v22, %v3736_v17  ;;  %v3254_v26 = vpop.f32.mrb[102].mxu1  ;;  %3275 = vmatprep.mubr.msk.bf16.mxu0 %vm751_vm4, %v1954_v18  ;;  %v3496_v22 = vld [vmem:[%s4479_s4 + $0x10] sm:$0xff] }
 0x944   :  { %v1925_v27 = vadd.f32 %v3254_v26, %v3736_v17  ;;  %v1882_v50 = vpop.f32.mrb[103].mxu1  ;;  %3276 = vmatmul.mubr.msk.bf16.gmra.mrb[88].mxu0 %vm751_vm4, %v1955_v13  ;;  %v1944_v29 = vmax.f32 %v1924_v21, 0.0  ;;  %v3497_v26 = vld [vmem:[%s4479_s4 + $0x18] sm:$0xff] }
 0x945   :  { %v1923_v28 = vadd.f32 %v1882_v50, %v3736_v17  ;;  %v1942_v37 = vmax.f32 %v1922_v25, 0.0  ;;  %v3498_v50 = vld [vmem:[%s4479_s4] sm:$0xff] }
 0x946   :  { %v1945_v34 = vmax.f32 %v1925_v27, 0.0 }
 0x947   :  { %v1943_v6 = vmax.f32 %v1923_v28, 0.0 }
 0x948   :  { %v1957_v41 = vpack.c.bf16 %v1945_v34, %v1944_v29  ;;  %v3499_v29 = vld [vmem:[%s4479_s4 + $0x8] sm:$0xff] }
 0x949   :  { %v1956_v42 = vpack.c.bf16 %v1943_v6, %v1942_v37  ;;  %v3257_v43 = vpop.f32.mrb[104].mxu1 }
 0x94a   :  { %v1928_v44 = vadd.f32 %v3257_v43, %v3736_v17  ;;  %v1895_v2 = vpop.f32.mrb[105].mxu1 }
 0x94b   :  { %v1926_v8 = vadd.f32 %v1895_v2, %v3736_v17  ;;  %v3258_v10 = vpop.f32.mrb[106].mxu1  ;;  %3279 = vmatprep.mubr.msk.bf16.mxu0 %vm751_vm4, %v1956_v42 }
 0x94c   :  { %v1929_v9 = vadd.f32 %v3258_v10, %v3736_v17  ;;  %v1898_v12 = vpop.f32.mrb[107].mxu1  ;;  %3280 = vmatmul.mubr.msk.bf16.gmra.mrb[92].mxu0 %vm751_vm4, %v1957_v41  ;;  %v1948_v46 = vmax.f32 %v1928_v44, 0.0 }
 0x94d   :  { %v1927_v45 = vadd.f32 %v1898_v12, %v3736_v17  ;;  %v1946_v53 = vmax.f32 %v1926_v8, 0.0 }
 0x94e   :  { %v1949_v48 = vmax.f32 %v1929_v9, 0.0 }
 0x94f   :  { %v1947_v54 = vmax.f32 %v1927_v45, 0.0 }
 0x950   :  { %v1959_v55 = vpack.c.bf16 %v1949_v48, %v1948_v46 }
 0x951   :  { %v1958_v56 = vpack.c.bf16 %v1947_v54, %v1946_v53  ;;  %v3500_v53 = vld [vmem:[%s4479_s4 + $0x30] sm:$0xff] }
 0x953   :  { %3283 = vmatprep.mubr.msk.bf16.mxu0 %vm751_vm4, %v1958_v56 }
 0x954   :  { %3284 = vmatmul.mubr.msk.bf16.gmra.mrb[96].mxu0 %vm751_vm4, %v1959_v55  ;;  %v3501_v55 = vld [vmem:[%s4479_s4 + $0x38] sm:$0xff] }
 0xa07   :  { %v3269_v58 = vpop.f32.mrb[80].mxu0 }
 0xa08   :  { %v2033_v59 = vadd.f32 %v3269_v58, %v3787_v40  ;;  %v2024_v16 = vpop.f32.mrb[81].mxu0  ;;  %v3502_v58 = vld [vmem:[%s4479_s4 + $0x20] sm:$0xff] }
 0xa09   :  { %v2025_v62 = vadd.f32 %v2024_v16, %v3787_v40  ;;  %v3270_v3 = vpop.f32.mrb[82].mxu0 }
 0xa0a   :  { %v2105_v4 = vmax.f32 %v2033_v59, 0.0  ;;  %v2036_v17 = vadd.f32 %v3270_v3, %v3787_v40  ;;  %v2027_v11 = vpop.f32.mrb[83].mxu0 }
 0xa0b   :  { %v2103_v13 = vmax.f32 %v2025_v62, 0.0  ;;  %v2028_v18 = vadd.f32 %v2027_v11, %v3787_v40 }
 0xa0c   :  { %v2106_v19 = vmax.f32 %v2036_v17, 0.0  ;;  %v2125_v25 = vmul.f32 %v3496_v22, %v2105_v4 }
 0xa0d   :  { %v2104_v21 = vmax.f32 %v2028_v18, 0.0  ;;  %v2123_v28 = vmul.f32 %v3498_v50, %v2103_v13 }
 0xa0e   :  { %v2126_v27 = vmul.f32 %v3497_v26, %v2106_v19 }
 0xa0f   :  { %v2124_v34 = vmul.f32 %v3499_v29, %v2104_v21  ;;  %v3273_v37 = vpop.f32.mrb[84].mxu0  ;;  %v3505_v29 = vld [vmem:[%s4479_s4 + $0x58] sm:$0xff] }
 0xa10   :  { %v2144_v6 = vpack.c.bf16 %v2126_v27, %v2125_v25  ;;  %v2049_v41 = vadd.f32 %v3273_v37, %v3787_v40  ;;  %v2040_v42 = vpop.f32.mrb[85].mxu0  ;;  %v3506_v37 = vld [vmem:[%s4479_s4 + $0x40] sm:$0xff] }
 0xa11   :  { %v2143_v43 = vpack.c.bf16 %v2124_v34, %v2123_v28  ;;  %v2041_v44 = vadd.f32 %v2040_v42, %v3787_v40  ;;  %v3274_v2 = vpop.f32.mrb[86].mxu0  ;;  %v3504_v28 = vld [vmem:[%s4479_s4 + $0x50] sm:$0xff] }
 0xa12   :  { %v2109_v8 = vmax.f32 %v2049_v41, 0.0  ;;  %v2052_v10 = vadd.f32 %v3274_v2, %v3787_v40  ;;  %v2043_v9 = vpop.f32.mrb[87].mxu0  ;;  %v3507_v41 = vld [vmem:[%s4479_s4 + $0x48] sm:$0xff] }
 0xa13   :  { %v2107_v12 = vmax.f32 %v2041_v44, 0.0  ;;  %v2044_v45 = vadd.f32 %v2043_v9, %v3787_v40  ;;  %3295 = vmatprep.mubr.msk.bf16.mxu0 %vm751_vm4, %v2143_v43 }
 0xa14   :  { %v2110_v46 = vmax.f32 %v2052_v10, 0.0  ;;  %3296 = vmatmul.mubr.msk.bf16.vlgmr.msra.gmra.mrb[100].mxu0 %vm751_vm4, %v2144_v6  ;;  %v2129_v54 = vmul.f32 %v3500_v53, %v2109_v8 }
 0xa15   :  { %v2108_v48 = vmax.f32 %v2044_v45, 0.0  ;;  %3316 = vmatpush3.bf16.msra.mxu0 %v3892_v51  ;;  %v2127_v59 = vmul.f32 %v3502_v58, %v2107_v12  ;;  %v3503_v51 = vld [vmem:[%s4479_s4 + $0x28] sm:$0xff]  ;;  %v3508_v58 = vld [vmem:[%s4479_s4 + $0x70] sm:$0xff] }
 0xa16   :  { %v2130_v56 = vmul.f32 %v3501_v55, %v2110_v46  ;;  %3317 = vmatprep.subr.bf16.mxu0 %v3516_v0 }
 0xa17   :  { %v2128_v16 = vmul.f32 %v3503_v51, %v2108_v48  ;;  %v3277_v62 = vpop.f32.mrb[88].mxu0  ;;  %v3509_v51 = vld [vmem:[%s4479_s4 + $0x78] sm:$0xff] }
 0xa18   :  { %v2146_v3 = vpack.c.bf16 %v2130_v56, %v2129_v54  ;;  %v2065_v4 = vadd.f32 %v3277_v62, %v3787_v40  ;;  %v2056_v17 = vpop.f32.mrb[89].mxu0  ;;  %v3510_v62 = vld [vmem:[%s4479_s4 + $0x60] sm:$0xff] }
 0xa19   :  { %v2145_v11 = vpack.c.bf16 %v2128_v16, %v2127_v59  ;;  %v2057_v13 = vadd.f32 %v2056_v17, %v3787_v40  ;;  %v3278_v18 = vpop.f32.mrb[90].mxu0  ;;  %3318 = vmatpush3.bf16.msra.mxu0 %v3898_v52 }
 0xa1a   :  { %v2113_v19 = vmax.f32 %v2065_v4, 0.0  ;;  %v2068_v21 = vadd.f32 %v3278_v18, %v3787_v40  ;;  %v2059_v22 = vpop.f32.mrb[91].mxu0  ;;  %3345 = vmatprep.subr.bf16.mxu0 %v3516_v0  ;;  %v3511_v4 = vld [vmem:[%s4479_s4 + $0x68] sm:$0xff] }
 0xa1b   :  { %v2111_v25 = vmax.f32 %v2057_v13, 0.0  ;;  %v2060_v26 = vadd.f32 %v2059_v22, %v3787_v40  ;;  %3299 = vmatprep.mubr.msk.bf16.mxu0 %vm751_vm4, %v2145_v11 }
 0xa1c   :  { %v2114_v27 = vmax.f32 %v2068_v21, 0.0  ;;  %3300 = vmatmul.mubr.msk.bf16.gmra.mrb[104].mxu0 %vm751_vm4, %v2146_v3  ;;  %v2133_v52 = vmul.f32 %v3504_v28, %v2113_v19 }
 0xa1d   :  { %v2112_v50 = vmax.f32 %v2060_v26, 0.0  ;;  %v2131_v6 = vmul.f32 %v3506_v37, %v2111_v25  ;;  %v3512_v37 = vld [vmem:[%s4479_s4 + $0x90] sm:$0xff] }
 0xa1e   :  { %v2134_v34 = vmul.f32 %v3505_v29, %v2114_v27 }
 0xa1f   :  { %v2132_v42 = vmul.f32 %v3507_v41, %v2112_v50  ;;  %v3281_v43 = vpop.f32.mrb[92].mxu0  ;;  %v3513_v41 = vld [vmem:[%s4479_s4 + $0x98] sm:$0xff] }
 0xa20   :  { %v2148_v44 = vpack.c.bf16 %v2134_v34, %v2133_v52  ;;  %v2081_v2 = vadd.f32 %v3281_v43, %v3787_v40  ;;  %v2072_v8 = vpop.f32.mrb[93].mxu0 }
 0xa21   :  { %v2147_v10 = vpack.c.bf16 %v2132_v42, %v2131_v6  ;;  %v2073_v9 = vadd.f32 %v2072_v8, %v3787_v40  ;;  %v3282_v12 = vpop.f32.mrb[94].mxu0 }
 0xa22   :  { %v2117_v45 = vmax.f32 %v2081_v2, 0.0  ;;  %v2084_v46 = vadd.f32 %v3282_v12, %v3787_v40  ;;  %v2075_v48 = vpop.f32.mrb[95].mxu0 }
 0xa23   :  { %v2115_v53 = vmax.f32 %v2073_v9, 0.0  ;;  %v2076_v54 = vadd.f32 %v2075_v48, %v3787_v40  ;;  %3303 = vmatprep.mubr.msk.bf16.mxu0 %vm751_vm4, %v2147_v10 }
 0xa24   :  { %v2118_v55 = vmax.f32 %v2084_v46, 0.0  ;;  %3304 = vmatmul.mubr.msk.bf16.gmra.mrb[108].mxu0 %vm751_vm4, %v2148_v44  ;;  %v2137_v59 = vmul.f32 %v3508_v58, %v2117_v45  ;;  %v3515_v44 = vld [vmem:[%s4479_s4 + $0x88] sm:$0xff] }
 0xa25   :  { %v2116_v56 = vmax.f32 %v2076_v54, 0.0  ;;  %v2135_v3 = vmul.f32 %v3510_v62, %v2115_v53 }
 0xa26   :  { %v2138_v16 = vmul.f32 %v3509_v51, %v2118_v55 }
 0xa27   :  { %v2136_v17 = vmul.f32 %v3511_v4, %v2116_v56  ;;  %v3285_v11 = vpop.f32.mrb[96].mxu0 }
 0xa28   :  { %v2150_v13 = vpack.c.bf16 %v2138_v16, %v2137_v59  ;;  %v2097_v18 = vadd.f32 %v3285_v11, %v3787_v40  ;;  %v2088_v19 = vpop.f32.mrb[97].mxu0 }
 0xa29   :  { %v2149_v21 = vpack.c.bf16 %v2136_v17, %v2135_v3  ;;  %v2089_v22 = vadd.f32 %v2088_v19, %v3787_v40  ;;  %v3286_v25 = vpop.f32.mrb[98].mxu0 }
 0xa2a   :  { %v2121_v26 = vmax.f32 %v2097_v18, 0.0  ;;  %v2100_v27 = vadd.f32 %v3286_v25, %v3787_v40  ;;  %v2091_v50 = vpop.f32.mrb[99].mxu0 }
 0xa2b   :  { %v2119_v28 = vmax.f32 %v2089_v22, 0.0  ;;  %v2092_v52 = vadd.f32 %v2091_v50, %v3787_v40  ;;  %3307 = vmatprep.mubr.msk.bf16.mxu0 %vm751_vm4, %v2149_v21  ;;  %v3514_v40 = vld [vmem:[%s4479_s4 + $0x80] sm:$0xff] }
 0xa2c   :  { %v2122_v29 = vmax.f32 %v2100_v27, 0.0  ;;  %3308 = vmatmul.mubr.msk.bf16.gmra.mrb[112].mxu0 %vm751_vm4, %v2150_v13  ;;  %v2141_v6 = vmul.f32 %v3512_v37, %v2121_v26 }
 0xa2d   :  { %v2120_v34 = vmax.f32 %v2092_v52, 0.0  ;;  %v2139_v43 = vmul.f32 %v3514_v40, %v2119_v28 }
 0xa2e   :  { %v2142_v42 = vmul.f32 %v3513_v41, %v2122_v29 }
 0xa2f   :  { %v2140_v2 = vmul.f32 %v3515_v44, %v2120_v34 }
 0xa30   :  { %v2152_v8 = vpack.c.bf16 %v2142_v42, %v2141_v6 }
 0xa31   :  { %v2151_v10 = vpack.c.bf16 %v2140_v2, %v2139_v43 }
 0xa33   :  { %3311 = vmatprep.mubr.msk.bf16.mxu0 %vm751_vm4, %v2151_v10 }
 0xa34   :  { %3312 = vmatmul.mubr.msk.bf16.gmra.mrb[116].mxu0 %vm751_vm4, %v2152_v8 }
 0xa35   :  { %3319 = vmatprep.mubr.msk.bf16.mxu0 %vm3517_vm1, %v3516_v0 }
 0xae7   :  { %v3297_v9 = vpop.f32.mrb[100].mxu0 }
 0xae8   :  { %v2217_v12 = vpop.f32.mrb[101].mxu0 }
 0xae9   :  { %v3298_v45 = vpop.f32.mrb[102].mxu0 }
 0xaea   :  { %v2297_v46 = vpack.c.bf16 %v3298_v45, %v3297_v9  ;;  %v2220_v48 = vpop.f32.mrb[103].mxu0 }
 0xaeb   :  { %v2296_v53 = vpack.c.bf16 %v2220_v48, %v2217_v12 }
 0xaed   :  { %2307 = vmatpush1.bf16.msra.mxu1 %v2296_v53 }
 0xaee   :  { %2308 = vmatprep.subr.bf16.mxu1 %v3518_v49 }
 0xaef   :  { %v3301_v54 = vpop.f32.mrb[104].mxu0 }
 0xaf0   :  { %v2233_v55 = vpop.f32.mrb[105].mxu0 }
 0xaf1   :  { %v3302_v56 = vpop.f32.mrb[106].mxu0  ;;  %2309 = vmatpush1.bf16.msra.mxu1 %v2297_v46 }
 0xaf2   :  { %v2299_v58 = vpack.c.bf16 %v3302_v56, %v3301_v54  ;;  %v2236_v59 = vpop.f32.mrb[107].mxu0  ;;  %2310 = vmatprep.subr.bf16.mxu1 %v3518_v49 }
 0xaf3   :  { %v2298_v51 = vpack.c.bf16 %v2236_v59, %v2233_v55 }
 0xaf5   :  { %2311 = vmatpush1.bf16.msra.mxu1 %v2298_v51 }
 0xaf6   :  { %2312 = vmatprep.subr.bf16.mxu1 %v3518_v49 }
 0xaf7   :  { %v3305_v16 = vpop.f32.mrb[108].mxu0 }
 0xaf8   :  { %v2249_v62 = vpop.f32.mrb[109].mxu0 }
 0xaf9   :  { %v3306_v3 = vpop.f32.mrb[110].mxu0  ;;  %2313 = vmatpush1.bf16.msra.mxu1 %v2299_v58 }
 0xafa   :  { %v2301_v4 = vpack.c.bf16 %v3306_v3, %v3305_v16  ;;  %v2252_v17 = vpop.f32.mrb[111].mxu0  ;;  %2314 = vmatprep.subr.bf16.mxu1 %v3518_v49 }
 0xafb   :  { %v2300_v11 = vpack.c.bf16 %v2252_v17, %v2249_v62 }
 0xafd   :  { %2315 = vmatpush1.bf16.msra.mxu1 %v2300_v11 }
 0xafe   :  { %2316 = vmatprep.subr.bf16.mxu1 %v3518_v49 }
 0xaff   :  { %v3309_v13 = vpop.f32.mrb[112].mxu0 }
 0xb00   :  { %v2265_v18 = vpop.f32.mrb[113].mxu0 }
 0xb01   :  { %v3310_v19 = vpop.f32.mrb[114].mxu0  ;;  %2317 = vmatpush1.bf16.msra.mxu1 %v2301_v4 }
 0xb02   :  { %v2303_v21 = vpack.c.bf16 %v3310_v19, %v3309_v13  ;;  %v2268_v22 = vpop.f32.mrb[115].mxu0  ;;  %2318 = vmatprep.subr.bf16.mxu1 %v3518_v49 }
 0xb03   :  { %v2302_v25 = vpack.c.bf16 %v2268_v22, %v2265_v18 }
 0xb05   :  { %2319 = vmatpush1.bf16.msra.mxu1 %v2302_v25 }
 0xb06   :  { %2320 = vmatprep.subr.bf16.mxu1 %v3518_v49 }
 0xb07   :  { %v3313_v26 = vpop.f32.mrb[116].mxu0 }
 0xb08   :  { %v2281_v27 = vpop.f32.mrb[117].mxu0 }
 0xb09   :  { %v3314_v50 = vpop.f32.mrb[118].mxu0  ;;  %2321 = vmatpush1.bf16.msra.mxu1 %v2303_v21 }
 0xb0a   :  { %v2305_v28 = vpack.c.bf16 %v3314_v50, %v3313_v26  ;;  %v2284_v52 = vpop.f32.mrb[119].mxu0  ;;  %2322 = vmatprep.subr.bf16.mxu1 %v3518_v49 }
 0xb0b   :  { %v2304_v29 = vpack.c.bf16 %v2284_v52, %v2281_v27 }
 0xb0d   :  { %2323 = vmatpush1.bf16.msra.mxu1 %v2304_v29 }
 0xb0e   :  { %2324 = vmatprep.subr.bf16.mxu1 %v3518_v49 }
 0xb11   :  { %2325 = vmatpush1.bf16.msra.mxu1 %v2305_v28 }
 0xb12   :  { %3331 = vmatprep.subr.bf16.mxu1 %v3516_v0 }
 0xb14   :  { %2339 = vmatmul.mubr.bf16.vlgmr.msra.gmra.mrb[108].mxu1 %v3918_v31 }
 0xb15   :  { %2800 = vmatprep.mubr.msk.bf16.mxu1 %vm1146_vm5, %v3923_v32  ;;  %3332 = vmatpush3.bf16.msra.mxu1 %v3927_v33 }
 0xb16   :  { %3361 = vmatprep.subr.bf16.mxu1 %v3516_v0 }
 0xb1c   :  { %2347 = vmatmul.mubr.bf16.gmra.mrb[112].mxu1 %v3940_v35 }
 0xb1d   :  { %2801 = vmatprep.mubr.msk.bf16.mxu1 %vm1146_vm5, %v3942_v36 }
 0xb24   :  { %2355 = vmatmul.mubr.bf16.gmra.mrb[116].mxu1 %v3947_v38 }
 0xb25   :  { %3333 = vmatprep.mubr.msk.bf16.mxu1 %vm3517_vm1, %v3516_v0 }
 0xb2c   :  { %3334 = vmatmul.mubr.msk.bf16.vlgmr.msra.gmra.mrb[120].mxu1 %vm141_vm2, %v4076_v61 }
 0xb2d   :  { %3337 = vmatprep.mubr.msk.bf16.mxu1 %vm3517_vm1, %v3516_v0  ;;  %3362 = vmatpush3.bf16.msra.mxu1 %v3990_v15 }
 0xb2e   :  { %3363 = vmatprep.subr.bf16.mxu1 %v3516_v0 }
 0xb31   :  { %3364 = vmatpush3.bf16.msra.mxu1 %v4018_v7 }
 0xb34   :  { %3338 = vmatmul.mubr.msk.bf16.gmra.mrb[124].mxu1 %vm141_vm2, %v4113_v24 }
 0xb35   :  { %3341 = vmatprep.mubr.msk.bf16.mxu1 %vm3517_vm1, %v3516_v0 }
 0xb3c   :  { %3342 = vmatmul.mubr.msk.bf16.gmra.mrb[128].mxu1 %vm141_vm2, %v4139_v39 }
 0xb3d   :  { %3365 = vmatprep.mubr.msk.bf16.mxu1 %vm3517_vm1, %v3516_v0 }
 0xbe7   :  { %v2340_v49 = vpop.f32.mrb[108].mxu1 }
 0xbe8   :  { %v2342_v31 = vpop.f32.mrb[109].mxu1 }
 0xbe9   :  { %v2343_v32 = vpop.f32.mrb[110].mxu1 }
 0xbea   :  { %v2362_v33 = vpack.c.bf16 %v2343_v32, %v2340_v49  ;;  %v2345_v35 = vpop.f32.mrb[111].mxu1 }
 0xbec   :  { %3320 = vmatmul.mubr.msk.bf16.vlgmr.msra.gmra.mrb[120].mxu0 %vm1146_vm5, %v2362_v33 }
 0xbed   :  { %3323 = vmatprep.mubr.msk.bf16.mxu0 %vm3517_vm1, %v3516_v0  ;;  %3346 = vmatpush3.bf16.msra.mxu0 %v3967_v5 }
 0xbee   :  { %3347 = vmatprep.subr.bf16.mxu0 %v3516_v0 }
 0xbef   :  { %v2348_v36 = vpop.f32.mrb[112].mxu1 }
 0xbf0   :  { %v2350_v38 = vpop.f32.mrb[113].mxu1 }
 0xbf1   :  { %v2351_v15 = vpop.f32.mrb[114].mxu1  ;;  %3348 = vmatpush3.bf16.msra.mxu0 %v3983_v63 }
 0xbf2   :  { %v2363_v7 = vpack.c.bf16 %v2351_v15, %v2348_v36  ;;  %v2353_v61 = vpop.f32.mrb[115].mxu1 }
 0xbf4   :  { %3324 = vmatmul.mubr.msk.bf16.gmra.mrb[124].mxu0 %vm1146_vm5, %v2363_v7 }
 0xbf5   :  { %3327 = vmatprep.mubr.msk.bf16.mxu0 %vm3517_vm1, %v3516_v0 }
 0xbf7   :  { %v2356_v24 = vpop.f32.mrb[116].mxu1 }
 0xbf8   :  { %v2364_v39 = vpack.c.bf16 %v2356_v24, %v2356_v24  ;;  %v2358_v34 = vpop.f32.mrb[117].mxu1 }
 0xbf9   :  { %v2359_v37 = vpop.f32.mrb[118].mxu1 }
 0xbfa   :  { %v2360_v6 = vpop.f32.mrb[119].mxu1 }
 0xbfc   :  { %3328 = vmatmul.mubr.msk.bf16.gmra.mrb[128].mxu0 %vm1146_vm5, %v2364_v39 }
 0xbfd   :  { %3349 = vmatprep.mubr.msk.bf16.mxu0 %vm3517_vm1, %v3516_v0 }
 0xbff   :  { %v2464_v5 = vpop.f32.mrb[120].mxu1 }
 0xc00   :  { %v3335_v41 = vpop.f32.mrb[121].mxu1 }
 0xc01   :  { %v2467_v63 = vpop.f32.mrb[122].mxu1 }
 0xc02   :  { %v3336_v42 = vpop.f32.mrb[123].mxu1 }
 0xc07   :  { %v2472_v40 = vpop.f32.mrb[124].mxu1 }
 0xc08   :  { %v3339_v43 = vpop.f32.mrb[125].mxu1 }
 0xc09   :  { %v2475_v44 = vpop.f32.mrb[126].mxu1 }
 0xc0a   :  { %v3340_v2 = vpop.f32.mrb[127].mxu1 }
 0xc0f   :  { %v2480_v8 = vpop.f32.mrb[128].mxu1 }
 0xc10   :  { %v3343_v10 = vpop.f32.mrb[129].mxu1 }
 0xc11   :  { %v2483_v9 = vpop.f32.mrb[130].mxu1 }
 0xc12   :  { %v3344_v12 = vpop.f32.mrb[131].mxu1 }
 0xcbf   :  { %v2408_v45 = vpop.f32.mrb[120].mxu0 }
 0xcc0   :  { %v2465_v46 = vadd.f32 %v2464_v5, %v2408_v45  ;;  %v3321_v48 = vpop.f32.mrb[121].mxu0 }
 0xcc1   :  { %v2411_v53 = vpop.f32.mrb[122].mxu0 }
 0xcc2   :  { %v2486_v54 = vadd.f32 %v2465_v46, %v3998_v20  ;;  %v2468_v55 = vadd.f32 %v2467_v63, %v2411_v53  ;;  %v3322_v56 = vpop.f32.mrb[123].mxu0 }
 0xcc4   :  { %v2487_v58 = vadd.f32 %v2468_v55, %v3998_v20  ;;  %v2491_v59 = vmax.f32 %v2486_v54, 0.0 }
 0xcc6   :  { %v2492_v51 = vmax.f32 %v2487_v58, 0.0 }
 0xcc7   :  { %v2416_v16 = vpop.f32.mrb[124].mxu0 }
 0xcc8   :  { %v2496_v62 = vpack.c.bf16 %v2492_v51, %v2491_v59  ;;  %v2473_v3 = vadd.f32 %v2472_v40, %v2416_v16  ;;  %v3325_v4 = vpop.f32.mrb[125].mxu0 }
 0xcc9   :  { %v2419_v17 = vpop.f32.mrb[126].mxu0 }
 0xcca   :  { %v2488_v11 = vadd.f32 %v2473_v3, %v3998_v20  ;;  %v2476_v13 = vadd.f32 %v2475_v44, %v2419_v17  ;;  %3350 = vmatmul.mubr.msk.bf16.vlgmr.msra.gmra.mrb[132].mxu0 %vm1146_vm5, %v2496_v62  ;;  %v3326_v18 = vpop.f32.mrb[127].mxu0 }
 0xccb   :  { %3353 = vmatprep.mubr.msk.bf16.mxu0 %vm3517_vm1, %v3516_v0 }
 0xccc   :  { %v2489_v19 = vadd.f32 %v2476_v13, %v3998_v20  ;;  %v2493_v21 = vmax.f32 %v2488_v11, 0.0 }
 0xcce   :  { %v2494_v22 = vmax.f32 %v2489_v19, 0.0 }
 0xccf   :  { %v2424_v25 = vpop.f32.mrb[128].mxu0 }
 0xcd0   :  { %v2497_v26 = vpack.c.bf16 %v2494_v22, %v2493_v21  ;;  %v2481_v27 = vadd.f32 %v2480_v8, %v2424_v25  ;;  %v3329_v50 = vpop.f32.mrb[129].mxu0 }
 0xcd1   :  { %v2427_v28 = vpop.f32.mrb[130].mxu0 }
 0xcd2   :  { %v2490_v52 = vadd.f32 %v2481_v27, %v3998_v20  ;;  %3354 = vmatmul.mubr.msk.bf16.gmra.mrb[136].mxu0 %vm1146_vm5, %v2497_v26  ;;  %v3330_v29 = vpop.f32.mrb[131].mxu0 }
 0xcd3   :  { %3357 = vmatprep.mubr.msk.bf16.mxu0 %vm3517_vm1, %v3516_v0 }
 0xcd4   :  { %v2495_v49 = vmax.f32 %v2490_v52, 0.0 }
 0xcd6   :  { %v2498_v31 = vpack.c.bf16 %v2495_v49, %v2495_v49 }
 0xcda   :  { %3358 = vmatmul.mubr.msk.bf16.gmra.mrb[140].mxu0 %vm1146_vm5, %v2498_v31 }
 0xd9d   :  { %v2542_v32 = vpop.f32.mrb[132].mxu0 }
 0xd9e   :  { %v2543_v33 = vadd.f32 %v2542_v32, %v4026_v1  ;;  %v3351_v35 = vpop.f32.mrb[133].mxu0 }
 0xd9f   :  { %v2545_v36 = vpop.f32.mrb[134].mxu0 }
 0xda0   :  { %v2546_v38 = vadd.f32 %v2545_v36, %v4026_v1  ;;  %v3352_v15 = vpop.f32.mrb[135].mxu0  ;;  %v2564_v7 = vmax.f32 %v2543_v33, 0.0 }
 0xda2   :  { %v2565_v20 = vmax.f32 %v2546_v38, 0.0 }
 0xda4   :  { %v2569_v61 = vpack.c.bf16 %v2565_v20, %v2564_v7 }
 0xda5   :  { %v2550_v24 = vpop.f32.mrb[136].mxu0 }
 0xda6   :  { %v2551_v39 = vadd.f32 %v2550_v24, %v4026_v1  ;;  %v3355_v34 = vpop.f32.mrb[137].mxu0  ;;  %3366 = vmatmul.mubr.msk.bf16.vlgmr.msra.gmra.mrb[132].mxu1 %vm1146_vm5, %v2569_v61 }
 0xda7   :  { %v2553_v37 = vpop.f32.mrb[138].mxu0  ;;  %3369 = vmatprep.mubr.msk.bf16.mxu1 %vm3517_vm1, %v3516_v0 }
 0xda8   :  { %v2554_v6 = vadd.f32 %v2553_v37, %v4026_v1  ;;  %v3356_v5 = vpop.f32.mrb[139].mxu0  ;;  %v2566_v41 = vmax.f32 %v2551_v39, 0.0 }
 0xdaa   :  { %v2567_v63 = vmax.f32 %v2554_v6, 0.0 }
 0xdac   :  { %v2570_v42 = vpack.c.bf16 %v2567_v63, %v2566_v41 }
 0xdad   :  { %v2558_v40 = vpop.f32.mrb[140].mxu0 }
 0xdae   :  { %v2559_v43 = vadd.f32 %v2558_v40, %v4026_v1  ;;  %v3359_v44 = vpop.f32.mrb[141].mxu0  ;;  %3370 = vmatmul.mubr.msk.bf16.gmra.mrb[136].mxu1 %vm1146_vm5, %v2570_v42 }
 0xdaf   :  { %v2561_v2 = vpop.f32.mrb[142].mxu0  ;;  %3373 = vmatprep.mubr.msk.bf16.mxu1 %vm3517_vm1, %v3516_v0 }
 0xdb0   :  { %v2568_v8 = vmax.f32 %v2559_v43, 0.0  ;;  %v3360_v10 = vpop.f32.mrb[143].mxu0 }
 0xdb2   :  { %v2571_v9 = vpack.c.bf16 %v2568_v8, %v2568_v8 }
 0xdb6   :  { %3374 = vmatmul.mubr.msk.bf16.gmra.mrb[140].mxu1 %vm1146_vm5, %v2571_v9 }
 0xe79   :  { %v2615_v12 = vpop.f32.mrb[132].mxu1 }
 0xe7a   :  { %v2616_v45 = vadd.f32 %v2615_v12, %v4050_v47  ;;  %v3367_v46 = vpop.f32.mrb[133].mxu1 }
 0xe7b   :  { %v2618_v48 = vpop.f32.mrb[134].mxu1 }
 0xe7c   :  { %v2637_v53 = vadd.f32 %v2616_v45, %v4056_v57  ;;  %v2619_v1 = vadd.f32 %v2618_v48, %v4050_v47  ;;  %v3368_v54 = vpop.f32.mrb[135].mxu1 }
 0xe7e   :  { %2814 = vst.msk [vmem:[%s4481_s7 + $0x28] sm:$0xff] %vm141_vm2, %v2637_v53  ;;  %v2638_v0 = vadd.f32 %v2619_v1, %v4067_v60 }
 0xe80   :  { %2815 = vst.msk [vmem:[%s4481_s7 + $0x30] sm:$0xff] %vm141_vm2, %v2638_v0 }
 0xe81   :  { %v2623_v55 = vpop.f32.mrb[136].mxu1 }
 0xe82   :  { %v2624_v56 = vadd.f32 %v2623_v55, %v4050_v47  ;;  %v3371_v58 = vpop.f32.mrb[137].mxu1 }
 0xe83   :  { %v2626_v57 = vpop.f32.mrb[138].mxu1 }
 0xe84   :  { %v2639_v59 = vadd.f32 %v2624_v56, %v4090_v14  ;;  %v2627_v51 = vadd.f32 %v2626_v57, %v4050_v47  ;;  %v3372_v16 = vpop.f32.mrb[139].mxu1 }
 0xe86   :  { %2816 = vst.msk [vmem:[%s4481_s7 + $0x38] sm:$0xff] %vm141_vm2, %v2639_v59  ;;  %v2640_v60 = vadd.f32 %v2627_v51, %v4104_v23 }
 0xe88   :  { %2817 = vst.msk [vmem:[%s4481_s7 + $0x40] sm:$0xff] %vm141_vm2, %v2640_v60 }
 0xe89   :  { %v2631_v62 = vpop.f32.mrb[140].mxu1 }
 0xe8a   :  { %v2632_v3 = vadd.f32 %v2631_v62, %v4050_v47  ;;  %v3375_v4 = vpop.f32.mrb[141].mxu1 }
 0xe8b   :  { %v2634_v14 = vpop.f32.mrb[142].mxu1 }
 0xe8c   :  { %v2641_v17 = vadd.f32 %v2632_v3, %v4128_v30  ;;  %v3376_v11 = vpop.f32.mrb[143].mxu1 }
 0xe8e   :  { %2818 = vst.msk [vmem:[%s4481_s7 + $0x48] sm:$0xff] %vm141_vm2, %v2641_v17 }

</bundles_post_ra>
